<compile_context>
chip_gen: v7x
topology: tpu7x:2x2x1
jax: 0.10.0
libtpu: 0.0.40
codegen_flags: <defaults>
</compile_context>

<pallas_src>
import functools

import jax
import jax.numpy as jnp
from jax import lax
from jax.experimental import pallas as pl
from jax.experimental.pallas import tpu as pltpu


# ----------------------------- Pallas kernel --------------------------------
def _vq_kernel(x_ref, cb_ref, o_ref, *, steps: int, s_dim: int, dot_dtype):
    x = x_ref[...]                      # (Bblk, N, D) f32, channel-last (wrapper transposed)
    bblk, N, D = x.shape
    cb = cb_ref[...]                    # (S, D, R) f32: raw codebook if steps==0, else
    R = cb.shape[-1]                    #   F.normalize(d0, dim=1, eps=1e-6) (loop-invariant)
    cb_lp = cb.astype(dot_dtype)        # bf16 MXU operand, f32 accumulation below  [#3]

    def per_codebook_dot(lhs_cl, rhs_dr):
        # Shared-codebook contraction WITHOUT materializing a per-slab replica:
        # one (Bblk//S * N, K) x (K, R') matmul per codebook s.              [#1,#4]
        K = lhs_cl.shape[-1]
        Rp = rhs_dr.shape[-1]
        if s_dim == 1:
            out = jnp.dot(lhs_cl.reshape(bblk * N, K), rhs_dr[0],
                          preferred_element_type=jnp.float32)
            return out.reshape(bblk, N, Rp)
        grp = bblk // s_dim             # slabs are ordered (b0,s0),(b0,s1),...
        xg = lhs_cl.reshape(grp, s_dim, N, K)
        outs = [jnp.dot(xg[:, s].reshape(grp * N, K), rhs_dr[s],
                        preferred_element_type=jnp.float32).reshape(grp, 1, N, Rp)
                for s in range(s_dim)]
        return jnp.concatenate(outs, axis=1).reshape(bblk, N, Rp)

    def softmax_last(s):
        # exact reciprocal: EUP slot is dominated by the exp, and approx error
        # would compound through the 6-step fixed point.                       [#10]
        m = jnp.max(s, axis=-1, keepdims=True)
        e = jnp.exp(s - m)
        return e / jnp.sum(e, axis=-1, keepdims=True)

    if steps == 0:
        # The pre-loop softmax is only live when the loop never runs.
        Cm = softmax_last(per_codebook_dot(x.astype(dot_dtype), cb_lp))   # (Bblk,N,R)
        cbT = jnp.swapaxes(cb_lp, 1, 2)     # (S, R, D): tiny, once per block, cold path
        o_ref[...] = per_codebook_dot(Cm.astype(dot_dtype), cbT).astype(o_ref.dtype)
        return

    # F.normalize(x, dim=1) — loop-invariant; lane reduce + EUP rsqrt (channel-last).
    ss = jnp.sum(x * x, axis=-1, keepdims=True)
    std_x = x * lax.rsqrt(jnp.maximum(ss, 1e-24))        # == x / max(||x||, 1e-12)
    std_x_lp = std_x.astype(dot_dtype)                   # loop-invariant MXU operand

    # --- step 1, peeled: contraction against the SHARED normalized codebook;
    #     no per-slab codebook replica is ever materialized.                 [#1]
    Cm = softmax_last(per_codebook_dot(std_x_lp, cb_lp))
    Cm = Cm / (jnp.sum(Cm, axis=-1, keepdims=True) + 1e-6)
    # torch 'bnr,bdr->bdn' (std_x's N axis in the 'r' slot, requires N == R);
    # channel-last this is the canonical (M,K)x(K,N) batched matmul.        [#4]
    Dm = jnp.einsum('bnr,brd->bnd', Cm.astype(dot_dtype), std_x_lp,
                    preferred_element_type=jnp.float32)                      # (Bblk,N,D)

    # --- steps 2..steps: fori_loop bounds the live ranges of the big f32
    #     temporaries; unroll=True keeps LLO scheduling visibility.          [#9]
    def body(_, carry):
        C_prev, Dm_prev = carry
        del C_prev
        dss = jnp.sum(Dm_prev * Dm_prev, axis=-1, keepdims=True)
        std_D = Dm_prev * lax.rsqrt(jnp.maximum(dss, 1e-12))  # F.normalize(D,1,eps=1e-6)
        # flash-attention-canonical batched A.B^T contraction                [#4]
        logits = jnp.einsum('bnd,brd->bnr', std_x_lp, std_D.astype(dot_dtype),
                            preferred_element_type=jnp.float32)
        C = softmax_last(logits)
        C = C / (jnp.sum(C, axis=-1, keepdims=True) + 1e-6)
        D_new = jnp.einsum('bnr,brd->bnd', C.astype(dot_dtype), std_x_lp,
                           preferred_element_type=jnp.float32)
        return (C, D_new)

    if steps > 1:
        Cm, Dm = lax.fori_loop(1, steps, body, (Cm, Dm), unroll=True)

    # x = torch.einsum('bnr,bdr->bdn', C, D) — emitted channel-last; with D a
    # multiple of 128 this store is lane-dense.                              [#8]
    out = jnp.einsum('bnr,brd->bnd', Cm.astype(dot_dtype), Dm.astype(dot_dtype),
                     preferred_element_type=jnp.float32)
    o_ref[...] = out.astype(o_ref.dtype)


# --------------------------- block / grid sizing -----------------------------
def _tpu_vmem_policy():
    kind = ""
    try:
        kind = jax.devices()[0].device_kind.lower()
    except Exception:
        pass
    if "v5" in kind or "v6" in kind:
        # 128 MiB physical VMEM: raise the scoped limit and the block budget; a
        # grid of 2-3 steps is enough on a single-TensorCore chip.        [#6,#7]
        return dict(budget=40 << 20, vmem_limit=64 << 20, min_grid=2, grid_mult=1)
    # v7x (64 MiB physical, 32 MiB scoped, 2 TCs) and unknown parts: smaller
    # budget, >=4 even grid steps so each megacore TC gets >=2 pipelined steps. [#5]
    return dict(budget=20 << 20, vmem_limit=32 << 20, min_grid=4, grid_mult=2)


def _choose_bblk(total, S, D, N, R):
    """Largest divisor of `total` (multiple of S) that fits the generation-aware
    VMEM budget while keeping enough grid steps for megacore + pipelining."""
    pol = _tpu_vmem_policy()
    # per-slab f32 bytes:
    #   2x(in)+2x(out) double-buffered blocks          : 4 * N*D
    #   std_x (f32 + bf16) + Dm/D_new carries + slack  : ~4 * N*D
    #   Cm carry + logits + exp temporaries            : ~3 * N*R
    per_slab = 4 * (4 * N * D + 4 * N * D + 3 * N * R)
    fixed = 4 * S * D * R * 2                      # codebook f32 + bf16 copy
    cap_slabs = max(S, int((pol["budget"] - fixed) // per_slab) // S * S)
    best = S                                       # always valid (total = B*S)
    for b in range(S, total + 1, S):
        if b > cap_slabs:
            break
        if total % b:
            continue
        g = total // b
        if g >= pol["min_grid"] and g % pol["grid_mult"] == 0:
            best = b
    return best, pol["vmem_limit"]


# --------------------------------- wrapper ------------------------------------
def vq_pallas(x, d0, *, S=1, R=64, steps=6, dot_dtype=jnp.bfloat16):
    """x: (B, C, H, W) float32, d0: (S, D, R) float32 (the registered buffer)."""
    B, Cch, H, W = x.shape
    D = Cch // S
    N = H * W
    assert Cch == S * D
    if steps > 0:
        assert N == R, "literal VQ einsum requires H*W == R"
    total = B * S

    # Channel-last slabs: the transposes live in XLA (layout plumbing fused with
    # the HBM copy), never on the kernel's XLU.                              [#2]
    x_cl = jnp.swapaxes(x.reshape(total, D, N).astype(jnp.float32), 1, 2)  # (total,N,D)

    d0 = d0.astype(jnp.float32)
    if steps > 0:
        # F.normalize(D_matrix, dim=1, eps=1e-6) is replication- and loop-invariant:
        # normalize the (S, D, R) buffer once here instead of per slab per step.
        d_norm = jnp.sqrt(jnp.sum(d0 * d0, axis=1, keepdims=True))
        cb = d0 / jnp.maximum(d_norm, 1e-6)
    else:
        cb = d0                                    # pre-loop softmax uses the raw buffer

    bblk, vmem_limit = _choose_bblk(total, S, D, N, R)
    grid = (total // bblk,)

    cost = pl.CostEstimate(
        flops=int(total * (2 * max(steps, 1) + 1) * 2 * D * N * R),
        transcendentals=int(total * max(steps, 1) * N * R),
        bytes_accessed=int((2 * total * N * D + S * D * R) * 4),
    )

    # NOTE: x / out could optionally be passed as bf16 to halve block DMA bytes
    # (perf review); kept f32 here for fidelity of the in-kernel normalization.
    out_cl = pl.pallas_call(
        functools.partial(_vq_kernel, steps=steps, s_dim=S, dot_dtype=dot_dtype),
        out_shape=jax.ShapeDtypeStruct((total, N, D), jnp.float32),
        grid_spec=pltpu.PrefetchScalarGridSpec(
            num_scalar_prefetch=0,
            grid=grid,
            in_specs=[
                pl.BlockSpec((bblk, N, D), lambda g: (g, 0, 0)),
                pl.BlockSpec((S, D, R), lambda g: (0, 0, 0)),    # codebook fetched once
            ],
            out_specs=pl.BlockSpec((bblk, N, D), lambda g: (g, 0, 0)),
        ),
        compiler_params=pltpu.CompilerParams(
            dimension_semantics=("parallel",),
            vmem_limit_bytes=vmem_limit,
        ),
        cost_estimate=cost,
    )(x_cl, cb)

    # TODO(synk): eval-mode `self.update(D_matrix)` mutates the registered buffer
    # in place (a training-state side effect); it does not change the returned
    # tensor, so it is not part of this kernel.
    return jnp.swapaxes(out_cl, 1, 2).reshape(B, Cch, H, W)


# ------------------------- pure-JAX reference ---------------------------------
def vq_reference(x, d0, *, S=1, R=64, steps=6):
    hi = jax.lax.Precision.HIGHEST
    B, C, H, W = x.shape
    D = C // S
    N = H * W
    xb = x.reshape(B * S, D, N).astype(jnp.float32)
    Dm = jnp.tile(d0.astype(jnp.float32), (B, 1, 1))
    Cm = jax.nn.softmax(jnp.einsum('bdn,bdr->bnr', xb, Dm, precision=hi), axis=-1)
    std_x = xb / jnp.maximum(
        jnp.sqrt(jnp.sum(xb * xb, axis=1, keepdims=True)), 1e-12)
    for _ in range(steps):
        std_D = Dm / jnp.maximum(
            jnp.sqrt(jnp.sum(Dm * Dm, axis=1, keepdims=True)), 1e-6)
        Cm = jax.nn.softmax(jnp.einsum('bdn,bdr->bnr', std_x, std_D, precision=hi),
                            axis=-1)
        Cm = Cm / (jnp.sum(Cm, axis=-1, keepdims=True) + 1e-6)
        Dm = jnp.einsum('bnr,bdr->bdn', Cm, std_x, precision=hi)
    out = jnp.einsum('bnr,bdr->bdn', Cm, Dm, precision=hi)
    return out.reshape(B, C, H, W)


# --------------------------------- demo ---------------------------------------
if __name__ == "__main__":
    S, D, R, steps = 1, 128, 64, 6
    B, C, H, W = 4, S * D, 8, 8           # H*W == R == 64 (required by the literal einsum)
                                          # D == 128 -> lane-dense channel-last stores

    key = jax.random.PRNGKey(0)
    kx, kd = jax.random.split(key)

    # deterministic buffer init: torch.rand(S, D, R) then F.normalize(dim=1)
    d0 = jax.random.uniform(kd, (S, D, R), dtype=jnp.float32)
    d0 = d0 / jnp.maximum(
        jnp.sqrt(jnp.sum(d0 * d0, axis=1, keepdims=True)), 1e-12)

    x = jax.random.uniform(kx, (B, C, H, W), dtype=jnp.float32)

    y = jax.block_until_ready(vq_pallas(x, d0, S=S, R=R, steps=steps))
    y_ref = jax.block_until_ready(vq_reference(x, d0, S=S, R=R, steps=steps))

    assert y.shape == (B, C, H, W)
    err = float(jnp.max(jnp.abs(y - y_ref)))
    # bf16 MXU operands (per perf review) vs. a HIGHEST-precision f32 reference;
    # a semantics bug would produce errors >> 1e-2 at these magnitudes (~0.1).
    assert err < 1e-2, f"max abs err {err}"
    print("KERNEL_OK")
</pallas_src>

<mosaic_0001>
module attributes {stable_mosaic.version = 11 : i64} {
  func.func @_vq_kernel(%arg0: i32, %arg1: memref<1x64x128xf32, #tpu.memory_space<vmem>>, %arg2: memref<1x128x64xf32, #tpu.memory_space<vmem>>, %arg3: memref<1x64x128xf32, #tpu.memory_space<vmem>>) attributes {dimension_semantics = [#tpu.dimension_semantics<parallel>], iteration_bounds = array<i64: 4>, scalar_prefetch = 0 : i64, scratch_operands = 0 : i64, tpu.core_type = #tpu.core_type<tc>, window_params = [{transform_indices = @transform_0, window_bounds = array<i64: 1, 64, 128>}, {pipeline_mode = #tpu.pipeline_mode<synchronous>, transform_indices = @transform_1, window_bounds = array<i64: 1, 128, 64>}, {transform_indices = @transform_2, window_bounds = array<i64: 1, 64, 128>}]} {
    %c0 = arith.constant 0 : index
    %c0_0 = arith.constant 0 : index
    %c0_1 = arith.constant 0 : index
    %0 = vector.load %arg1[%c0, %c0_0, %c0_1] : memref<1x64x128xf32, #tpu.memory_space<vmem>>, vector<1x64x128xf32>
    %c0_2 = arith.constant 0 : index
    %c0_3 = arith.constant 0 : index
    %c0_4 = arith.constant 0 : index
    %1 = vector.load %arg2[%c0_2, %c0_3, %c0_4] : memref<1x128x64xf32, #tpu.memory_space<vmem>>, vector<1x128x64xf32>
    %2 = arith.truncf %1 : vector<1x128x64xf32> to vector<1x128x64xbf16>
    %3 = arith.mulf %0, %0 : vector<1x64x128xf32>
    %cst = arith.constant dense<0.000000e+00> : vector<1x64xf32>
    %4 = vector.multi_reduction <add>, %3, %cst [2] : vector<1x64x128xf32> to vector<1x64xf32>
    %5 = vector.shape_cast %4 : vector<1x64xf32> to vector<1x64x1xf32>
    %cst_5 = arith.constant 1.000000e-24 : f32
    %6 = vector.broadcast %cst_5 : f32 to vector<1x64x1xf32>
    %7 = arith.maximumf %5, %6 : vector<1x64x1xf32>
    %8 = math.rsqrt %7 : vector<1x64x1xf32>
    %9 = vector.broadcast %8 : vector<1x64x1xf32> to vector<1x64x128xf32>
    %10 = arith.mulf %0, %9 : vector<1x64x128xf32>
    %11 = arith.truncf %10 : vector<1x64x128xf32> to vector<1x64x128xbf16>
    %12 = vector.shape_cast %11 : vector<1x64x128xbf16> to vector<64x128xbf16>
    %13 = vector.shape_cast %2 : vector<1x128x64xbf16> to vector<128x64xbf16>
    %cst_6 = arith.constant dense<0.000000e+00> : vector<64x64xf32>
    %14 = tpu.matmul %12, %13, %cst_6 {dimension_numbers = #tpu.dot_dimension_numbers<[1], [0], [0], [1], [0, 0, 1, 1], [], []>} : vector<64x128xbf16>, vector<128x64xbf16>, vector<64x64xf32> -> vector<64x64xf32>
    %15 = vector.shape_cast %14 : vector<64x64xf32> to vector<1x64x64xf32>
    %cst_7 = arith.constant dense<0xFF800000> : vector<1x64xf32>
    %16 = vector.multi_reduction <maximumf>, %15, %cst_7 [2] : vector<1x64x64xf32> to vector<1x64xf32>
    %17 = vector.shape_cast %16 : vector<1x64xf32> to vector<1x64x1xf32>
    %18 = vector.broadcast %17 : vector<1x64x1xf32> to vector<1x64x64xf32>
    %19 = arith.subf %15, %18 : vector<1x64x64xf32>
    %20 = math.exp %19 : vector<1x64x64xf32>
    %cst_8 = arith.constant dense<0.000000e+00> : vector<1x64xf32>
    %21 = vector.multi_reduction <add>, %20, %cst_8 [2] : vector<1x64x64xf32> to vector<1x64xf32>
    %22 = vector.shape_cast %21 : vector<1x64xf32> to vector<1x64x1xf32>
    %23 = vector.broadcast %22 : vector<1x64x1xf32> to vector<1x64x64xf32>
    %24 = arith.divf %20, %23 : vector<1x64x64xf32>
    %cst_9 = arith.constant dense<0.000000e+00> : vector<1x64xf32>
    %25 = vector.multi_reduction <add>, %24, %cst_9 [2] : vector<1x64x64xf32> to vector<1x64xf32>
    %26 = vector.shape_cast %25 : vector<1x64xf32> to vector<1x64x1xf32>
    %cst_10 = arith.constant 9.99999997E-7 : f32
    %27 = vector.broadcast %cst_10 : f32 to vector<1x64x1xf32>
    %28 = arith.addf %26, %27 : vector<1x64x1xf32>
    %29 = vector.broadcast %28 : vector<1x64x1xf32> to vector<1x64x64xf32>
    %30 = arith.divf %24, %29 : vector<1x64x64xf32>
    %31 = arith.truncf %30 : vector<1x64x64xf32> to vector<1x64x64xbf16>
    "tpu.trace_start"() <{level = 10 : i32, message = "bnr,brd->bnd"}> : () -> ()
    %cst_11 = arith.constant dense<0.000000e+00> : vector<1x64x128xf32>
    %32 = tpu.matmul %31, %11, %cst_11 {dimension_numbers = #tpu.dot_dimension_numbers<[2], [1], [1], [2], [0, 0, 0, 1, 1, 2], [0], [0]>} : vector<1x64x64xbf16>, vector<1x64x128xbf16>, vector<1x64x128xf32> -> vector<1x64x128xf32>
    "tpu.trace_stop"() : () -> ()
    %c0_i32 = arith.constant 0 : i32
    %33 = arith.mulf %32, %32 : vector<1x64x128xf32>
    %cst_12 = arith.constant dense<0.000000e+00> : vector<1x64xf32>
    %34 = vector.multi_reduction <add>, %33, %cst_12 [2] : vector<1x64x128xf32> to vector<1x64xf32>
    %35 = vector.shape_cast %34 : vector<1x64xf32> to vector<1x64x1xf32>
    %cst_13 = arith.constant 9.99999996E-13 : f32
    %36 = vector.broadcast %cst_13 : f32 to vector<1x64x1xf32>
    %37 = arith.maximumf %35, %36 : vector<1x64x1xf32>
    %38 = math.rsqrt %37 : vector<1x64x1xf32>
    %39 = vector.broadcast %38 : vector<1x64x1xf32> to vector<1x64x128xf32>
    %40 = arith.mulf %32, %39 : vector<1x64x128xf32>
    %41 = arith.truncf %40 : vector<1x64x128xf32> to vector<1x64x128xbf16>
    "tpu.trace_start"() <{level = 10 : i32, message = "bnd,brd->bnr"}> : () -> ()
    %cst_14 = arith.constant dense<0.000000e+00> : vector<1x64x64xf32>
    %42 = tpu.matmul %11, %41, %cst_14 {dimension_numbers = #tpu.dot_dimension_numbers<[2], [2], [1], [1], [0, 0, 0, 1, 1, 1], [0], [0]>} : vector<1x64x128xbf16>, vector<1x64x128xbf16>, vector<1x64x64xf32> -> vector<1x64x64xf32>
    "tpu.trace_stop"() : () -> ()
    %cst_15 = arith.constant dense<0xFF800000> : vector<1x64xf32>
    %43 = vector.multi_reduction <maximumf>, %42, %cst_15 [2] : vector<1x64x64xf32> to vector<1x64xf32>
    %44 = vector.shape_cast %43 : vector<1x64xf32> to vector<1x64x1xf32>
    %45 = vector.broadcast %44 : vector<1x64x1xf32> to vector<1x64x64xf32>
    %46 = arith.subf %42, %45 : vector<1x64x64xf32>
    %47 = math.exp %46 : vector<1x64x64xf32>
    %cst_16 = arith.constant dense<0.000000e+00> : vector<1x64xf32>
    %48 = vector.multi_reduction <add>, %47, %cst_16 [2] : vector<1x64x64xf32> to vector<1x64xf32>
    %49 = vector.shape_cast %48 : vector<1x64xf32> to vector<1x64x1xf32>
    %50 = vector.broadcast %49 : vector<1x64x1xf32> to vector<1x64x64xf32>
    %51 = arith.divf %47, %50 : vector<1x64x64xf32>
    %cst_17 = arith.constant dense<0.000000e+00> : vector<1x64xf32>
    %52 = vector.multi_reduction <add>, %51, %cst_17 [2] : vector<1x64x64xf32> to vector<1x64xf32>
    %53 = vector.shape_cast %52 : vector<1x64xf32> to vector<1x64x1xf32>
    %cst_18 = arith.constant 9.99999997E-7 : f32
    %54 = vector.broadcast %cst_18 : f32 to vector<1x64x1xf32>
    %55 = arith.addf %53, %54 : vector<1x64x1xf32>
    %56 = vector.broadcast %55 : vector<1x64x1xf32> to vector<1x64x64xf32>
    %57 = arith.divf %51, %56 : vector<1x64x64xf32>
    %58 = arith.truncf %57 : vector<1x64x64xf32> to vector<1x64x64xbf16>
    "tpu.trace_start"() <{level = 10 : i32, message = "bnr,brd->bnd"}> : () -> ()
    %cst_19 = arith.constant dense<0.000000e+00> : vector<1x64x128xf32>
    %59 = tpu.matmul %58, %11, %cst_19 {dimension_numbers = #tpu.dot_dimension_numbers<[2], [1], [1], [2], [0, 0, 0, 1, 1, 2], [0], [0]>} : vector<1x64x64xbf16>, vector<1x64x128xbf16>, vector<1x64x128xf32> -> vector<1x64x128xf32>
    "tpu.trace_stop"() : () -> ()
    %c1_i32 = arith.constant 1 : i32
    %60 = arith.mulf %59, %59 : vector<1x64x128xf32>
    %cst_20 = arith.constant dense<0.000000e+00> : vector<1x64xf32>
    %61 = vector.multi_reduction <add>, %60, %cst_20 [2] : vector<1x64x128xf32> to vector<1x64xf32>
    %62 = vector.shape_cast %61 : vector<1x64xf32> to vector<1x64x1xf32>
    %cst_21 = arith.constant 9.99999996E-13 : f32
    %63 = vector.broadcast %cst_21 : f32 to vector<1x64x1xf32>
    %64 = arith.maximumf %62, %63 : vector<1x64x1xf32>
    %65 = math.rsqrt %64 : vector<1x64x1xf32>
    %66 = vector.broadcast %65 : vector<1x64x1xf32> to vector<1x64x128xf32>
    %67 = arith.mulf %59, %66 : vector<1x64x128xf32>
    %68 = arith.truncf %67 : vector<1x64x128xf32> to vector<1x64x128xbf16>
    "tpu.trace_start"() <{level = 10 : i32, message = "bnd,brd->bnr"}> : () -> ()
    %cst_22 = arith.constant dense<0.000000e+00> : vector<1x64x64xf32>
    %69 = tpu.matmul %11, %68, %cst_22 {dimension_numbers = #tpu.dot_dimension_numbers<[2], [2], [1], [1], [0, 0, 0, 1, 1, 1], [0], [0]>} : vector<1x64x128xbf16>, vector<1x64x128xbf16>, vector<1x64x64xf32> -> vector<1x64x64xf32>
    "tpu.trace_stop"() : () -> ()
    %cst_23 = arith.constant dense<0xFF800000> : vector<1x64xf32>
    %70 = vector.multi_reduction <maximumf>, %69, %cst_23 [2] : vector<1x64x64xf32> to vector<1x64xf32>
    %71 = vector.shape_cast %70 : vector<1x64xf32> to vector<1x64x1xf32>
    %72 = vector.broadcast %71 : vector<1x64x1xf32> to vector<1x64x64xf32>
    %73 = arith.subf %69, %72 : vector<1x64x64xf32>
    %74 = math.exp %73 : vector<1x64x64xf32>
    %cst_24 = arith.constant dense<0.000000e+00> : vector<1x64xf32>
    %75 = vector.multi_reduction <add>, %74, %cst_24 [2] : vector<1x64x64xf32> to vector<1x64xf32>
    %76 = vector.shape_cast %75 : vector<1x64xf32> to vector<1x64x1xf32>
    %77 = vector.broadcast %76 : vector<1x64x1xf32> to vector<1x64x64xf32>
    %78 = arith.divf %74, %77 : vector<1x64x64xf32>
    %cst_25 = arith.constant dense<0.000000e+00> : vector<1x64xf32>
    %79 = vector.multi_reduction <add>, %78, %cst_25 [2] : vector<1x64x64xf32> to vector<1x64xf32>
    %80 = vector.shape_cast %79 : vector<1x64xf32> to vector<1x64x1xf32>
    %cst_26 = arith.constant 9.99999997E-7 : f32
    %81 = vector.broadcast %cst_26 : f32 to vector<1x64x1xf32>
    %82 = arith.addf %80, %81 : vector<1x64x1xf32>
    %83 = vector.broadcast %82 : vector<1x64x1xf32> to vector<1x64x64xf32>
    %84 = arith.divf %78, %83 : vector<1x64x64xf32>
    %85 = arith.truncf %84 : vector<1x64x64xf32> to vector<1x64x64xbf16>
    "tpu.trace_start"() <{level = 10 : i32, message = "bnr,brd->bnd"}> : () -> ()
    %cst_27 = arith.constant dense<0.000000e+00> : vector<1x64x128xf32>
    %86 = tpu.matmul %85, %11, %cst_27 {dimension_numbers = #tpu.dot_dimension_numbers<[2], [1], [1], [2], [0, 0, 0, 1, 1, 2], [0], [0]>} : vector<1x64x64xbf16>, vector<1x64x128xbf16>, vector<1x64x128xf32> -> vector<1x64x128xf32>
    "tpu.trace_stop"() : () -> ()
    %c2_i32 = arith.constant 2 : i32
    %87 = arith.mulf %86, %86 : vector<1x64x128xf32>
    %cst_28 = arith.constant dense<0.000000e+00> : vector<1x64xf32>
    %88 = vector.multi_reduction <add>, %87, %cst_28 [2] : vector<1x64x128xf32> to vector<1x64xf32>
    %89 = vector.shape_cast %88 : vector<1x64xf32> to vector<1x64x1xf32>
    %cst_29 = arith.constant 9.99999996E-13 : f32
    %90 = vector.broadcast %cst_29 : f32 to vector<1x64x1xf32>
    %91 = arith.maximumf %89, %90 : vector<1x64x1xf32>
    %92 = math.rsqrt %91 : vector<1x64x1xf32>
    %93 = vector.broadcast %92 : vector<1x64x1xf32> to vector<1x64x128xf32>
    %94 = arith.mulf %86, %93 : vector<1x64x128xf32>
    %95 = arith.truncf %94 : vector<1x64x128xf32> to vector<1x64x128xbf16>
    "tpu.trace_start"() <{level = 10 : i32, message = "bnd,brd->bnr"}> : () -> ()
    %cst_30 = arith.constant dense<0.000000e+00> : vector<1x64x64xf32>
    %96 = tpu.matmul %11, %95, %cst_30 {dimension_numbers = #tpu.dot_dimension_numbers<[2], [2], [1], [1], [0, 0, 0, 1, 1, 1], [0], [0]>} : vector<1x64x128xbf16>, vector<1x64x128xbf16>, vector<1x64x64xf32> -> vector<1x64x64xf32>
    "tpu.trace_stop"() : () -> ()
    %cst_31 = arith.constant dense<0xFF800000> : vector<1x64xf32>
    %97 = vector.multi_reduction <maximumf>, %96, %cst_31 [2] : vector<1x64x64xf32> to vector<1x64xf32>
    %98 = vector.shape_cast %97 : vector<1x64xf32> to vector<1x64x1xf32>
    %99 = vector.broadcast %98 : vector<1x64x1xf32> to vector<1x64x64xf32>
    %100 = arith.subf %96, %99 : vector<1x64x64xf32>
    %101 = math.exp %100 : vector<1x64x64xf32>
    %cst_32 = arith.constant dense<0.000000e+00> : vector<1x64xf32>
    %102 = vector.multi_reduction <add>, %101, %cst_32 [2] : vector<1x64x64xf32> to vector<1x64xf32>
    %103 = vector.shape_cast %102 : vector<1x64xf32> to vector<1x64x1xf32>
    %104 = vector.broadcast %103 : vector<1x64x1xf32> to vector<1x64x64xf32>
    %105 = arith.divf %101, %104 : vector<1x64x64xf32>
    %cst_33 = arith.constant dense<0.000000e+00> : vector<1x64xf32>
    %106 = vector.multi_reduction <add>, %105, %cst_33 [2] : vector<1x64x64xf32> to vector<1x64xf32>
    %107 = vector.shape_cast %106 : vector<1x64xf32> to vector<1x64x1xf32>
    %cst_34 = arith.constant 9.99999997E-7 : f32
    %108 = vector.broadcast %cst_34 : f32 to vector<1x64x1xf32>
    %109 = arith.addf %107, %108 : vector<1x64x1xf32>
    %110 = vector.broadcast %109 : vector<1x64x1xf32> to vector<1x64x64xf32>
    %111 = arith.divf %105, %110 : vector<1x64x64xf32>
    %112 = arith.truncf %111 : vector<1x64x64xf32> to vector<1x64x64xbf16>
    "tpu.trace_start"() <{level = 10 : i32, message = "bnr,brd->bnd"}> : () -> ()
    %cst_35 = arith.constant dense<0.000000e+00> : vector<1x64x128xf32>
    %113 = tpu.matmul %112, %11, %cst_35 {dimension_numbers = #tpu.dot_dimension_numbers<[2], [1], [1], [2], [0, 0, 0, 1, 1, 2], [0], [0]>} : vector<1x64x64xbf16>, vector<1x64x128xbf16>, vector<1x64x128xf32> -> vector<1x64x128xf32>
    "tpu.trace_stop"() : () -> ()
    %c3_i32 = arith.constant 3 : i32
    %114 = arith.mulf %113, %113 : vector<1x64x128xf32>
    %cst_36 = arith.constant dense<0.000000e+00> : vector<1x64xf32>
    %115 = vector.multi_reduction <add>, %114, %cst_36 [2] : vector<1x64x128xf32> to vector<1x64xf32>
    %116 = vector.shape_cast %115 : vector<1x64xf32> to vector<1x64x1xf32>
    %cst_37 = arith.constant 9.99999996E-13 : f32
    %117 = vector.broadcast %cst_37 : f32 to vector<1x64x1xf32>
    %118 = arith.maximumf %116, %117 : vector<1x64x1xf32>
    %119 = math.rsqrt %118 : vector<1x64x1xf32>
    %120 = vector.broadcast %119 : vector<1x64x1xf32> to vector<1x64x128xf32>
    %121 = arith.mulf %113, %120 : vector<1x64x128xf32>
    %122 = arith.truncf %121 : vector<1x64x128xf32> to vector<1x64x128xbf16>
    "tpu.trace_start"() <{level = 10 : i32, message = "bnd,brd->bnr"}> : () -> ()
    %cst_38 = arith.constant dense<0.000000e+00> : vector<1x64x64xf32>
    %123 = tpu.matmul %11, %122, %cst_38 {dimension_numbers = #tpu.dot_dimension_numbers<[2], [2], [1], [1], [0, 0, 0, 1, 1, 1], [0], [0]>} : vector<1x64x128xbf16>, vector<1x64x128xbf16>, vector<1x64x64xf32> -> vector<1x64x64xf32>
    "tpu.trace_stop"() : () -> ()
    %cst_39 = arith.constant dense<0xFF800000> : vector<1x64xf32>
    %124 = vector.multi_reduction <maximumf>, %123, %cst_39 [2] : vector<1x64x64xf32> to vector<1x64xf32>
    %125 = vector.shape_cast %124 : vector<1x64xf32> to vector<1x64x1xf32>
    %126 = vector.broadcast %125 : vector<1x64x1xf32> to vector<1x64x64xf32>
    %127 = arith.subf %123, %126 : vector<1x64x64xf32>
    %128 = math.exp %127 : vector<1x64x64xf32>
    %cst_40 = arith.constant dense<0.000000e+00> : vector<1x64xf32>
    %129 = vector.multi_reduction <add>, %128, %cst_40 [2] : vector<1x64x64xf32> to vector<1x64xf32>
    %130 = vector.shape_cast %129 : vector<1x64xf32> to vector<1x64x1xf32>
    %131 = vector.broadcast %130 : vector<1x64x1xf32> to vector<1x64x64xf32>
    %132 = arith.divf %128, %131 : vector<1x64x64xf32>
    %cst_41 = arith.constant dense<0.000000e+00> : vector<1x64xf32>
    %133 = vector.multi_reduction <add>, %132, %cst_41 [2] : vector<1x64x64xf32> to vector<1x64xf32>
    %134 = vector.shape_cast %133 : vector<1x64xf32> to vector<1x64x1xf32>
    %cst_42 = arith.constant 9.99999997E-7 : f32
    %135 = vector.broadcast %cst_42 : f32 to vector<1x64x1xf32>
    %136 = arith.addf %134, %135 : vector<1x64x1xf32>
    %137 = vector.broadcast %136 : vector<1x64x1xf32> to vector<1x64x64xf32>
    %138 = arith.divf %132, %137 : vector<1x64x64xf32>
    %139 = arith.truncf %138 : vector<1x64x64xf32> to vector<1x64x64xbf16>
    "tpu.trace_start"() <{level = 10 : i32, message = "bnr,brd->bnd"}> : () -> ()
    %cst_43 = arith.constant dense<0.000000e+00> : vector<1x64x128xf32>
    %140 = tpu.matmul %139, %11, %cst_43 {dimension_numbers = #tpu.dot_dimension_numbers<[2], [1], [1], [2], [0, 0, 0, 1, 1, 2], [0], [0]>} : vector<1x64x64xbf16>, vector<1x64x128xbf16>, vector<1x64x128xf32> -> vector<1x64x128xf32>
    "tpu.trace_stop"() : () -> ()
    %c4_i32 = arith.constant 4 : i32
    %141 = arith.mulf %140, %140 : vector<1x64x128xf32>
    %cst_44 = arith.constant dense<0.000000e+00> : vector<1x64xf32>
    %142 = vector.multi_reduction <add>, %141, %cst_44 [2] : vector<1x64x128xf32> to vector<1x64xf32>
    %143 = vector.shape_cast %142 : vector<1x64xf32> to vector<1x64x1xf32>
    %cst_45 = arith.constant 9.99999996E-13 : f32
    %144 = vector.broadcast %cst_45 : f32 to vector<1x64x1xf32>
    %145 = arith.maximumf %143, %144 : vector<1x64x1xf32>
    %146 = math.rsqrt %145 : vector<1x64x1xf32>
    %147 = vector.broadcast %146 : vector<1x64x1xf32> to vector<1x64x128xf32>
    %148 = arith.mulf %140, %147 : vector<1x64x128xf32>
    %149 = arith.truncf %148 : vector<1x64x128xf32> to vector<1x64x128xbf16>
    "tpu.trace_start"() <{level = 10 : i32, message = "bnd,brd->bnr"}> : () -> ()
    %cst_46 = arith.constant dense<0.000000e+00> : vector<1x64x64xf32>
    %150 = tpu.matmul %11, %149, %cst_46 {dimension_numbers = #tpu.dot_dimension_numbers<[2], [2], [1], [1], [0, 0, 0, 1, 1, 1], [0], [0]>} : vector<1x64x128xbf16>, vector<1x64x128xbf16>, vector<1x64x64xf32> -> vector<1x64x64xf32>
    "tpu.trace_stop"() : () -> ()
    %cst_47 = arith.constant dense<0xFF800000> : vector<1x64xf32>
    %151 = vector.multi_reduction <maximumf>, %150, %cst_47 [2] : vector<1x64x64xf32> to vector<1x64xf32>
    %152 = vector.shape_cast %151 : vector<1x64xf32> to vector<1x64x1xf32>
    %153 = vector.broadcast %152 : vector<1x64x1xf32> to vector<1x64x64xf32>
    %154 = arith.subf %150, %153 : vector<1x64x64xf32>
    %155 = math.exp %154 : vector<1x64x64xf32>
    %cst_48 = arith.constant dense<0.000000e+00> : vector<1x64xf32>
    %156 = vector.multi_reduction <add>, %155, %cst_48 [2] : vector<1x64x64xf32> to vector<1x64xf32>
    %157 = vector.shape_cast %156 : vector<1x64xf32> to vector<1x64x1xf32>
    %158 = vector.broadcast %157 : vector<1x64x1xf32> to vector<1x64x64xf32>
    %159 = arith.divf %155, %158 : vector<1x64x64xf32>
    %cst_49 = arith.constant dense<0.000000e+00> : vector<1x64xf32>
    %160 = vector.multi_reduction <add>, %159, %cst_49 [2] : vector<1x64x64xf32> to vector<1x64xf32>
    %161 = vector.shape_cast %160 : vector<1x64xf32> to vector<1x64x1xf32>
    %cst_50 = arith.constant 9.99999997E-7 : f32
    %162 = vector.broadcast %cst_50 : f32 to vector<1x64x1xf32>
    %163 = arith.addf %161, %162 : vector<1x64x1xf32>
    %164 = vector.broadcast %163 : vector<1x64x1xf32> to vector<1x64x64xf32>
    %165 = arith.divf %159, %164 : vector<1x64x64xf32>
    %166 = arith.truncf %165 : vector<1x64x64xf32> to vector<1x64x64xbf16>
    "tpu.trace_start"() <{level = 10 : i32, message = "bnr,brd->bnd"}> : () -> ()
    %cst_51 = arith.constant dense<0.000000e+00> : vector<1x64x128xf32>
    %167 = tpu.matmul %166, %11, %cst_51 {dimension_numbers = #tpu.dot_dimension_numbers<[2], [1], [1], [2], [0, 0, 0, 1, 1, 2], [0], [0]>} : vector<1x64x64xbf16>, vector<1x64x128xbf16>, vector<1x64x128xf32> -> vector<1x64x128xf32>
    "tpu.trace_stop"() : () -> ()
    %168 = arith.truncf %165 : vector<1x64x64xf32> to vector<1x64x64xbf16>
    %169 = arith.truncf %167 : vector<1x64x128xf32> to vector<1x64x128xbf16>
    "tpu.trace_start"() <{level = 10 : i32, message = "bnr,brd->bnd"}> : () -> ()
    %cst_52 = arith.constant dense<0.000000e+00> : vector<1x64x128xf32>
    %170 = tpu.matmul %168, %169, %cst_52 {dimension_numbers = #tpu.dot_dimension_numbers<[2], [1], [1], [2], [0, 0, 0, 1, 1, 2], [0], [0]>} : vector<1x64x64xbf16>, vector<1x64x128xbf16>, vector<1x64x128xf32> -> vector<1x64x128xf32>
    "tpu.trace_stop"() : () -> ()
    %c0_53 = arith.constant 0 : index
    %c0_54 = arith.constant 0 : index
    %c0_55 = arith.constant 0 : index
    %171 = vector.load %arg3[%c0_53, %c0_54, %c0_55] : memref<1x64x128xf32, #tpu.memory_space<vmem>>, vector<1x64x128xf32>
    tpu.vector_store %arg3[%c0_53, %c0_54, %c0_55], %170 {strides = array<i32>} : memref<1x64x128xf32, #tpu.memory_space<vmem>>, vector<1x64x128xf32>,
    return
  }
  func.func @transform_0(%arg0: i32) -> (i32, i32, i32) {
    %c0_i32 = arith.constant 0 : i32
    %c0_i32_0 = arith.constant 0 : i32
    %c0_i32_1 = arith.constant 0 : i32
    return %arg0, %c0_i32, %c0_i32_0 : i32, i32, i32
  }
  func.func @transform_1(%arg0: i32) -> (i32, i32, i32) {
    %c0_i32 = arith.constant 0 : i32
    %c0_i32_0 = arith.constant 0 : i32
    %c0_i32_1 = arith.constant 0 : i32
    %c0_i32_2 = arith.constant 0 : i32
    return %c0_i32, %c0_i32_0, %c0_i32_1 : i32, i32, i32
  }
  func.func @transform_2(%arg0: i32) -> (i32, i32, i32) {
    %c0_i32 = arith.constant 0 : i32
    %c0_i32_0 = arith.constant 0 : i32
    %c0_i32_1 = arith.constant 0 : i32
    return %arg0, %c0_i32, %c0_i32_0 : i32, i32, i32
  }
}

</mosaic_0001>

<bundles_post_ra>
// kernel: tpu_custom_call.1
= control target key start
LH: loop header
LB: loop body
LE: loop exit
PB: predicated region body
PF: predicated region fallthrough
CT: control target
= control target key end

     0   :  { %7 = vsyncpa [#allocation3], 0  ;;  %s3797_s0 = inlined_call_operand.hbm [shape: f32[4,64,128], index: 0, kind: input, shape index: {}]   ;;  %s3798_s1 = inlined_call_operand.vmem [shape: f32[1,128,64], index: 1, kind: input, shape index: {}]   ;;  %s3799_s2 = inlined_call_operand.hbm [shape: f32[4,64,128], index: 2, kind: output, shape index: {}]  }
   0x1   :  { %9 = vsyncpa [#allocation3 + $0x1], 0 }
   0x2   :  { %10 = vsyncpa [#allocation4], 0 }
   0x3   :  { %12 = vsyncpa [#allocation4 + $0x1], 0  ;;  %s3293_s9 = smov 0   ;;  %s3295_s10 = smov 0  }
   0x4   :  { %s3297_s11 = smov 0   ;;  %s3299_s12 = smov 0  }
   0x5 LB: > { %s3314_s13 = sadd.s32 4294967295, %s3270_s12   ;;  %s2364_s14 = sadd.s32 4294967294, %s3270_s12   ;;  %s3270_s12 = sphi %s3299_s12, %s3811_s12   ;;  %s3266_s11 = sphi %s3297_s11, %s3810_s11   ;;  %s3262_s10 = sphi %s3295_s10, %s3809_s10   ;;  %s3258_s9 = sphi %s3293_s9, %s3808_s9  }
   0x6   : > { %s3318_s15 = sadd.s32 1, %s3270_s12   ;;  %s25_s16 = sadd.s32 1, %s3266_s11 }
   0x7   : > { %s22_s17 = ssub.s32 %s3270_s12, %s3318_s15  ;;  %p32_p0 = scmp.ne.s32.totalorder %s3266_s11, %s3262_s10 }
   0x8   : > { %p23_p1 = scmp.eq.s32.totalorder %s22_s17, 0  ;;  %p33_p2 = scmp.eq.s32.totalorder %s3270_s12, 0 }
   0x9   : > { %p38_p3 = scmp.ne.s32.totalorder %s3262_s10, %s3258_s9  ;;  %p39_p4 = scmp.eq.s32.totalorder %s3314_s13, 0 }
   0xa   : > { %s3330_s18 = scalar_select %p23_p1, %s3266_s11, %s25_s16  }
   0xb   : > { %p3332_p5 = por %p33_p2, %p32_p0  ;;  %p3336_p6 = por %p39_p4, %p38_p3 }
   0xc   : > { %p83_p7 = scmp.eq.s32.totalorder %s3314_s13, 3  ;;  %p89_p8 = scmp.eq.s32.totalorder %s2364_s14, 3 }
   0xd   : > { %p2752_p9 = scmp.lt.s32.totalorder %s3270_s12, 4  ;;  %s112_s23 = sand.u32 1, %s3266_s11  }
   0xe   : > { %p3342_p10 = por %p83_p7, %p32_p0  ;;  %p3346_p11 = por %p89_p8, %p38_p3 }
   0xf   : > { %s2406_s24 = sshll.u32 %s3270_s12, 10  ;;  %s2367_s25 = sshll.u32 %s112_s23, 6 }
  0x10   : > { %s3803_s21 = scalar_select %p3342_p10, 1, 0 }
  0x11   : > { %s3804_s22 = scalar_select %p3346_p11, 1, 0 }
  0x12   : > { %s3355_s28 = scalar_lea.hbm %s3797_s0, %s2406_s24  ;;  %s116_s29 = scalar_lea.vmem [#allocation2], %s2367_s25 }
  0x13   : > { %s123_s30 = sshll.u32 %s116_s29, 4  ;;  %p3359_p12 = pnand %p2752_p9, %p3332_p5  ;;  %s3363_s30 = int_to_ptr.vmem [resolvable:$true] %s123_s30 }
  0x14   : > { %s3365_s4 = scalar_lea.sflag [#allocation3], %s112_s23  ;;  %s3174_s5 = scalar_lea.hbm %s3355_s28, 1024 }
  0x15   : > { %p3175_p13 = scmp.ne.s32.totalorder %s3355_s28, %s3174_s5  ;;  %p3176_p0 = pneg %p3359_p12 }
  0x16   : > { %s3179_s8 = scalar_lea.hbm %s3797_s0, 4096  ;;  %p3180_p3 = scmp.lt.u32.totalorder %s3355_s28, %s3797_s0 }
  0x17   : > { %p3177_p1 = pnand %p3176_p0, %p3175_p13  ;;  %p3181_p4 = scmp.lt.u32.totalorder %s3179_s8, %s3174_s5 }
  0x18   : > { %p3183_p7 = scmp.lt.u32.totalorder %s3174_s5, %s3355_s28 }
  0x19   : > { %p3178_p2 = pneg %p3177_p1  ;;  %p3182_p5 = por %p3181_p4, %p3180_p3 }
  0x1b   : > { %p3184_p8 = por %p3183_p7, %p3182_p5 }
  0x1d   : > { %p3185_p9 = pnand %p3184_p8, %p3178_p2 }
  0x1f   : > { %3188 = shalt.err (!%p3185_p9)
}
  0x20   : > { %s3189_s17 = scalar_lea.vmem %s3363_s30, 1024  ;;  %s3272_s19 = smov [#allocation2]  }
  0x21   : > { %p3190_p13 = scmp.ne.s32.totalorder %s3363_s30, %s3189_s17  ;;  %s3194_s23 = sshll.u32 %s3272_s19, 4  ;;  %s3195_s23 = int_to_ptr.vmem [resolvable:$false] %s3194_s23 }
  0x22   : > { %s3196_s24 = scalar_lea.vmem %s3195_s23, 2048  ;;  %p3197_p10 = scmp.lt.s32.totalorder %s3363_s30, %s3195_s23 }
  0x23   : > { %p3192_p1 = pnand %p3190_p13, %p3176_p0  ;;  %p3198_p3 = scmp.lt.s32.totalorder %s3196_s24, %s3189_s17 }
  0x25   : > { %p3193_p11 = pneg %p3192_p1  ;;  %p3199_p4 = por %p3198_p3, %p3197_p10 }
  0x27   : > { %p3200_p5 = pnand %p3199_p4, %p3193_p11 }
  0x29   : > { %3203 = shalt.err (!%p3200_p5)
}
  0x2a   : > { %s3273_s25 = smov 128   ;;  %s3274_s26 = smov 8  }
  0x2b   : > { %2747 = dma.hbm_to_vmem [thread:$0]  (!%p3359_p12), %s3355_s28, 1024, %s3363_s30, %s3365_s4, %s3273_s25, %s3273_s25, %s3274_s26  }
  0x2c   : > { %p2370_p0 = scmp.ge.s32.totalorder %s3270_s12, 1  ;;  %p131_p2 = scmp.lt.s32.totalorder %s3270_s12, 5 }
  0x2e   : > { %p132_p7 = pnand %p2370_p0, %p131_p2 }
  0x2f   : > { %s3396_s27 = sand.u32 (!%p132_p7), 1, %s3262_s10  }
  0x30   : > { %135 = sbr.rel (%p132_p7) target bundleno = 6885 (0x1ae5), region = 28  ;;  %s2371_s29 = sshll.u32 (!%p132_p7), %s3396_s27, 6 }
  0x31   : > { %s138_s5 = scalar_lea.sflag (!%p132_p7), [#allocation3], %s3396_s27  ;;  %s141_s6 = scalar_lea.vmem (!%p132_p7), [#allocation2], %s2371_s29 }
  0x37   : > { %3249 = dma.done.wait (%p3336_p6), %s138_s5, 1024  }
  0x38   : > { %3251 = vsyncadd (%p3336_p6), %s138_s5, 4294966272  ;;  %v3406_v0 = vld [vmem:[%s141_s6 + $0x10] sm:$0xff]  ;;  %v3408_v1 = vld [vmem:[%s141_s6] sm:$0xff]  ;;  %vm312_vm0 = vcmask 523264   ;;  %s161_s5 = scalar_lea.vmem [#allocation5], %s2371_s29  ;;  %s2407_s28 = sshll.u32 %s3314_s13, 10 }
  0x39   : > { %v3410_v2 = vld [vmem:[%s141_s6 + $0x18] sm:$0xff]  ;;  %v197_v3 = vmul.f32 %v3406_v0, %v3406_v0  ;;  %v195_v4 = vmul.f32 %v3408_v1, %v3408_v1  ;;  %v3416_v5 = vld [vmem:[%s141_s6 + $0x8] sm:$0xff]  ;;  %v171_v6 = vld [vmem:[%s3798_s1] sm:$0xff]  ;;  %s3754_s3 = scalar_lea.hbm %s3799_s2, %s2407_s28  ;;  %s2278_s13 = scalar_lea.sflag [#allocation4], %s3396_s27 }
  0x3a   : > { %v198_v7 = vmul.f32 %v3410_v2, %v3410_v2  ;;  %v196_v8 = vmul.f32 %v3416_v5, %v3416_v5  ;;  %v172_v9 = vld [vmem:[%s3798_s1 + $0x8] sm:$0xff]  ;;  %v173_v10 = vld [vmem:[%s3798_s1 + $0x10] sm:$0xff]  ;;  %v174_v11 = vld [vmem:[%s3798_s1 + $0x18] sm:$0xff]  ;;  %p3806_p10 = scmp.ne.s32.totalorder %s3803_s21, 0  ;;  %s3275_s4 = smov [#allocation5]  }
  0x3b   : > { %207 = vadd.xlane.f32.xlu1 %v197_v3  ;;  %203 = vadd.xlane.f32.xlu0 %v195_v4  ;;  %v3434_v12 = vld [vmem:[%s141_s6 + $0x28] sm:$0xff]  ;;  %v3436_v13 = vld [vmem:[%s141_s6 + $0x20] sm:$0xff]  ;;  %v187_v14 = vpack.c.bf16 %v172_v9, %v171_v6  ;;  %v188_v15 = vpack.c.bf16 %v174_v11, %v173_v10  ;;  %v3448_v20 = vld [vmem:[%s141_s6 + $0x38] sm:$0xff]  ;;  %s3208_s7 = sshll.u32 %s3275_s4, 4  ;;  %s3209_s7 = int_to_ptr.vmem [resolvable:$false] %s3208_s7 }
  0x3c   : > { %v175_v16 = vld [vmem:[%s3798_s1 + $0x20] sm:$0xff]  ;;  %v176_v17 = vld [vmem:[%s3798_s1 + $0x28] sm:$0xff]  ;;  %v200_v18 = vmul.f32 %v3434_v12, %v3434_v12  ;;  %v199_v19 = vmul.f32 %v3436_v13, %v3436_v13  ;;  %v3450_v21 = vld [vmem:[%s141_s6 + $0x30] sm:$0xff]  ;;  %v202_v23 = vmul.f32 %v3448_v20, %v3448_v20  ;;  %s2291_s6 = sshll.u32 %s161_s5, 4  ;;  %s3210_s8 = scalar_lea.vmem %s3209_s7, 2048  ;;  %s3749_s6 = int_to_ptr.vmem [resolvable:$true] %s2291_s6 }
  0x3d   : > { %2516 = vmatprep.subr.bf16.mxu0 %v187_v14  ;;  %v189_v22 = vpack.c.bf16 %v176_v17, %v175_v16  ;;  %v201_v24 = vmul.f32 %v3450_v21, %v3450_v21  ;;  %v177_v25 = vld [vmem:[%s3798_s1 + $0x30] sm:$0xff]  ;;  %v178_v26 = vld [vmem:[%s3798_s1 + $0x38] sm:$0xff]  ;;  %v179_v28 = vld [vmem:[%s3798_s1 + $0x40] sm:$0xff]  ;;  %s3204_s29 = scalar_lea.vmem %s3749_s6, 1024  ;;  %p3211_p8 = scmp.lt.s32.totalorder %s3749_s6, %s3209_s7 }
  0x3e   : > { %2517 = vmatpush3.bf16.msra.mxu0 %v187_v14  ;;  %v190_v27 = vpack.c.bf16 %v178_v26, %v177_v25  ;;  %v180_v29 = vld [vmem:[%s3798_s1 + $0x48] sm:$0xff]  ;;  %v181_v31 = vld [vmem:[%s3798_s1 + $0x50] sm:$0xff]  ;;  %v182_v32 = vld [vmem:[%s3798_s1 + $0x58] sm:$0xff]  ;;  %p3205_p6 = scmp.ne.s32.totalorder %s3749_s6, %s3204_s29  ;;  %p3212_p9 = scmp.lt.s32.totalorder %s3210_s8, %s3204_s29 }
  0x3f   : > { %209 = vadd.xlane.f32.xlu1 %v198_v7  ;;  %205 = vadd.xlane.f32.xlu0 %v196_v8  ;;  %v191_v30 = vpack.c.bf16 %v180_v29, %v179_v28  ;;  %v192_v33 = vpack.c.bf16 %v182_v32, %v181_v31  ;;  %v183_v34 = vld [vmem:[%s3798_s1 + $0x60] sm:$0xff]  ;;  %v184_v35 = vld [vmem:[%s3798_s1 + $0x68] sm:$0xff]  ;;  %v185_v37 = vld [vmem:[%s3798_s1 + $0x70] sm:$0xff] }
  0x40   : > { %2518 = vmatprep.subr.bf16.mxu0 %v188_v15  ;;  %v193_v36 = vpack.c.bf16 %v184_v35, %v183_v34  ;;  %v186_v38 = vld [vmem:[%s3798_s1 + $0x78] sm:$0xff]  ;;  %p3206_p11 = pnand %p3205_p6, %p3806_p10  ;;  %p3213_p13 = por %p3212_p9, %p3211_p8 }
  0x41   : > { %v194_v39 = vpack.c.bf16 %v186_v38, %v185_v37 }
  0x42   : > { %2519 = vmatpush3.bf16.msra.mxu0 %v188_v15  ;;  %p3207_p12 = pneg %p3206_p11 }
  0x43   : > { %213 = vadd.xlane.f32.xlu1 %v200_v18  ;;  %211 = vadd.xlane.f32.xlu0 %v199_v19 }
  0x44   : > { %2520 = vmatprep.subr.bf16.mxu0 %v189_v22  ;;  %p3214_p1 = pnand %p3213_p13, %p3207_p12 }
  0x46   : > { %2521 = vmatpush3.bf16.msra.mxu0 %v189_v22 }
  0x47   : > { %217 = vadd.xlane.f32.xlu1 %v202_v23  ;;  %215 = vadd.xlane.f32.xlu0 %v201_v24 }
  0x48   : > { %2522 = vmatprep.subr.bf16.mxu0 %v190_v27 }
  0x4a   : > { %2523 = vmatpush3.bf16.msra.mxu0 %v190_v27 }
  0x4b   : > { %2524 = vmatprep.subr.bf16.mxu0 %v191_v30 }
  0x4e   : > { %2525 = vmatpush3.bf16.msra.mxu0 %v191_v30 }
  0x4f   : > { %2526 = vmatprep.subr.bf16.mxu0 %v192_v33 }
  0x52   : > { %2527 = vmatpush3.bf16.msra.mxu0 %v192_v33 }
  0x53   : > { %2528 = vmatprep.subr.bf16.mxu0 %v193_v36 }
  0x56   : > { %2529 = vmatpush3.bf16.msra.mxu0 %v193_v36 }
  0x57   : > { %2530 = vmatprep.subr.bf16.mxu0 %v194_v39 }
  0x5a   : > { %2531 = vmatpush3.bf16.msra.mxu0 %v194_v39 }
  0xc8   : > { %v208_v40 = vpop.xlane.xlu1 %207  ;;  %v204_v41 = vpop.xlane.xlu0 %203 }
  0xc9   : > { %v221_v42 = vmax.f32 %v208_v40, 1e-24  ;;  %v219_v43 = vmax.f32 %v204_v41, 1e-24 }
  0xcb   : > { %2790 = vrsqrt.f32 %v221_v42 }
  0xcc   : > { %v210_v44 = vpop.xlane.xlu1 %209  ;;  %v206_v45 = vpop.xlane.xlu0 %205  ;;  %2792 = vrsqrt.f32 %v219_v43 }
  0xcd   : > { %v222_v46 = vmax.f32 %v210_v44, 1e-24  ;;  %v220_v47 = vmax.f32 %v206_v45, 1e-24 }
  0xcf   : > { %2794 = vrsqrt.f32 %v222_v46 }
  0xd0   : > { %2796 = vrsqrt.f32 %v220_v47  ;;  %v214_v48 = vpop.xlane.xlu1 %213  ;;  %v212_v49 = vpop.xlane.xlu0 %211 }
  0xd1   : > { %v224_v50 = vmax.f32 %v214_v48, 1e-24  ;;  %v223_v51 = vmax.f32 %v212_v49, 1e-24 }
  0xd3   : > { %2798 = vrsqrt.f32 %v224_v50 }
  0xd4   : > { %2800 = vrsqrt.f32 %v223_v51  ;;  %v218_v52 = vpop.xlane.xlu1 %217  ;;  %v216_v53 = vpop.xlane.xlu0 %215 }
  0xd5   : > { %v226_v54 = vmax.f32 %v218_v52, 1e-24  ;;  %v225_v55 = vmax.f32 %v216_v53, 1e-24  ;;  %v2791_v56 = vpop.eup %2790 }
  0xd6   : > { %v2793_v57 = vpop.eup %2792  ;;  %v237_v60 = vmul.f32 %v2791_v56, %v3406_v0 }
  0xd7   : > { %2802 = vrsqrt.f32 %v226_v54  ;;  %v235_v62 = vmul.f32 %v2793_v57, %v3408_v1 }
  0xd8   : > { %2804 = vrsqrt.f32 %v225_v55 }
  0xd9   : > { %v2795_v58 = vpop.eup %2794 }
  0xda   : > { %v2797_v59 = vpop.eup %2796  ;;  %v238_v61 = vmul.f32 %v2795_v58, %v3410_v2 }
  0xdb   : > { %v236_v63 = vmul.f32 %v2797_v59, %v3416_v5 }
  0xdc   : > { %v3490_v3 = vpack.c.bf16 %v238_v61, %v237_v60 }
  0xdd   : > { %v2799_v4 = vpop.eup %2798  ;;  %v3492_v6 = vpack.c.bf16 %v236_v63, %v235_v62 }
  0xde   : > { %v2801_v7 = vpop.eup %2800  ;;  %v240_v8 = vmul.f32 %v2799_v4, %v3434_v12 }
  0xdf   : > { %v239_v9 = vmul.f32 %v2801_v7, %v3436_v13  ;;  %2532 = vmatprep.mubr.bf16.mxu0 %v3492_v6  ;;  %2540 = vmatprep.subr.bf16.mxu1 %v3492_v6 }
  0xe0   : > { %2572 = vmatprep.subr.bf16.mxu0 %v3492_v6  ;;  %2533 = vmatmul.mubr.bf16.vlgmr.msra.gmra.mrb[0].mxu0 %v3490_v3 }
  0xe1   : > { %v2803_v0 = vpop.eup %2802  ;;  %v3500_v1 = vpack.c.bf16 %v240_v8, %v239_v9  ;;  %2541 = vmatpush3.bf16.msra.mxu1 %v3492_v6  ;;  %2573 = vmatpush3.bf16.msra.mxu0 %v3492_v6 }
  0xe2   : > { %v2805_v2 = vpop.eup %2804  ;;  %v242_v5 = vmul.f32 %v2803_v0, %v3448_v20  ;;  %2542 = vmatprep.subr.bf16.mxu1 %v3490_v3  ;;  %2574 = vmatprep.subr.bf16.mxu0 %v3490_v3 }
  0xe3   : > { %v241_v10 = vmul.f32 %v2805_v2, %v3450_v21  ;;  %2536 = vmatprep.mubr.bf16.mxu0 %v3500_v1 }
  0xe5   : > { %v3509_v11 = vpack.c.bf16 %v242_v5, %v241_v10  ;;  %2543 = vmatpush3.bf16.msra.mxu1 %v3490_v3  ;;  %2575 = vmatpush3.bf16.msra.mxu0 %v3490_v3 }
  0xe6   : > { %2544 = vmatprep.subr.bf16.mxu1 %v3500_v1  ;;  %2576 = vmatprep.subr.bf16.mxu0 %v3500_v1 }
  0xe8   : > { %2537 = vmatmul.mubr.bf16.gmra.mrb[4].mxu0 %v3509_v11 }
  0xe9   : > { %2545 = vmatpush3.bf16.msra.mxu1 %v3500_v1  ;;  %2577 = vmatpush3.bf16.msra.mxu0 %v3500_v1 }
  0xea   : > { %2546 = vmatprep.subr.bf16.mxu1 %v3509_v11  ;;  %2578 = vmatprep.subr.bf16.mxu0 %v3509_v11 }
  0xed   : > { %2547 = vmatpush3.bf16.msra.mxu1 %v3509_v11  ;;  %2579 = vmatpush3.bf16.msra.mxu0 %v3509_v11 }
 0x1b3   : > { %v2534_v12 = vpop.f32.mrb[0].mxu0 }
 0x1b4   : > { %v281_v13 = vpop.f32.mrb[1].mxu0  ;;  %v319_v18 = vsel %vm312_vm0, %v2534_v12, -inf }
 0x1b5   : > { %v2535_v14 = vpop.f32.mrb[2].mxu0  ;;  %v313_v15 = vsel %vm312_vm0, %v281_v13, -inf }
 0x1b6   : > { %314 = vmax.xlane.f32.xlu0 %v313_v15  ;;  %v284_v16 = vpop.f32.mrb[3].mxu0  ;;  %v322_v20 = vsel %vm312_vm0, %v2535_v14, -inf }
 0x1b7   : > { %v316_v17 = vsel %vm312_vm0, %v284_v16, -inf }
 0x1b8   : > { %317 = vmax.xlane.f32.xlu1 %v316_v17 }
 0x1ba   : > { %320 = vmax.xlane.f32.xlu0 %v319_v18 }
 0x1bb   : > { %v2538_v19 = vpop.f32.mrb[4].mxu0 }
 0x1bc   : > { %323 = vmax.xlane.f32.xlu1 %v322_v20  ;;  %v297_v21 = vpop.f32.mrb[5].mxu0  ;;  %v331_v26 = vsel %vm312_vm0, %v2538_v19, -inf }
 0x1bd   : > { %v2539_v22 = vpop.f32.mrb[6].mxu0  ;;  %v325_v23 = vsel %vm312_vm0, %v297_v21, -inf }
 0x1be   : > { %326 = vmax.xlane.f32.xlu0 %v325_v23  ;;  %v300_v24 = vpop.f32.mrb[7].mxu0  ;;  %v334_v27 = vsel %vm312_vm0, %v2539_v22, -inf }
 0x1bf   : > { %v328_v25 = vsel %vm312_vm0, %v300_v24, -inf }
 0x1c0   : > { %329 = vmax.xlane.f32.xlu1 %v328_v25 }
 0x1c2   : > { %332 = vmax.xlane.f32.xlu0 %v331_v26 }
 0x1c4   : > { %335 = vmax.xlane.f32.xlu1 %v334_v27 }
 0x243   : > { %v315_v28 = vpop.xlane.xlu0 %314 }
 0x244   : > { %v337_v29 = vsub.f32 %v281_v13, %v315_v28 }
 0x245   : > { %v318_v30 = vpop.xlane.xlu1 %317 }
 0x246   : > { %v345_v31 = vmul.f32 1.442695, %v337_v29  ;;  %v338_v32 = vsub.f32 %v284_v16, %v318_v30 }
 0x247   : > { %v321_v33 = vpop.xlane.xlu0 %320 }
 0x248   : > { %2806 = vpow2.f32 %v345_v31  ;;  %v347_v34 = vmul.f32 1.442695, %v338_v32  ;;  %v339_v35 = vsub.f32 %v2534_v12, %v321_v33 }
 0x249   : > { %v324_v36 = vpop.xlane.xlu1 %323 }
 0x24a   : > { %2808 = vpow2.f32 %v347_v34  ;;  %v349_v37 = vmul.f32 1.442695, %v339_v35  ;;  %v340_v38 = vsub.f32 %v2535_v14, %v324_v36 }
 0x24b   : > { %v327_v39 = vpop.xlane.xlu0 %326 }
 0x24c   : > { %2810 = vpow2.f32 %v349_v37  ;;  %v351_v40 = vmul.f32 1.442695, %v340_v38  ;;  %v341_v41 = vsub.f32 %v297_v21, %v327_v39 }
 0x24d   : > { %v330_v42 = vpop.xlane.xlu1 %329 }
 0x24e   : > { %2812 = vpow2.f32 %v351_v40  ;;  %v353_v43 = vmul.f32 1.442695, %v341_v41  ;;  %v342_v44 = vsub.f32 %v300_v24, %v330_v42 }
 0x24f   : > { %v333_v45 = vpop.xlane.xlu0 %332 }
 0x250   : > { %2814 = vpow2.f32 %v353_v43  ;;  %v355_v46 = vmul.f32 1.442695, %v342_v44  ;;  %v343_v47 = vsub.f32 %v2538_v19, %v333_v45 }
 0x251   : > { %v336_v48 = vpop.xlane.xlu1 %335 }
 0x252   : > { %v2807_v49 = vpop.eup %2806  ;;  %2816 = vpow2.f32 %v355_v46  ;;  %v357_v50 = vmul.f32 1.442695, %v343_v47  ;;  %v344_v51 = vsub.f32 %v2539_v22, %v336_v48 }
 0x253   : > { %v361_v52 = vsel %vm312_vm0, %v2807_v49, 0.0 }
 0x254   : > { %v2809_v53 = vpop.eup %2808  ;;  %2818 = vpow2.f32 %v357_v50  ;;  %v359_v54 = vmul.f32 1.442695, %v344_v51  ;;  %362 = vadd.xlane.f32.xlu0 %v361_v52 }
 0x255   : > { %v364_v55 = vsel %vm312_vm0, %v2809_v53, 0.0 }
 0x256   : > { %v2811_v56 = vpop.eup %2810  ;;  %2820 = vpow2.f32 %v359_v54  ;;  %365 = vadd.xlane.f32.xlu1 %v364_v55 }
 0x257   : > { %v367_v57 = vsel %vm312_vm0, %v2811_v56, 0.0 }
 0x258   : > { %v2813_v58 = vpop.eup %2812  ;;  %368 = vadd.xlane.f32.xlu0 %v367_v57 }
 0x259   : > { %v370_v59 = vsel %vm312_vm0, %v2813_v58, 0.0 }
 0x25a   : > { %v2815_v60 = vpop.eup %2814  ;;  %371 = vadd.xlane.f32.xlu1 %v370_v59 }
 0x25b   : > { %v373_v61 = vsel %vm312_vm0, %v2815_v60, 0.0 }
 0x25c   : > { %v2817_v62 = vpop.eup %2816  ;;  %374 = vadd.xlane.f32.xlu0 %v373_v61 }
 0x25d   : > { %v376_v63 = vsel %vm312_vm0, %v2817_v62, 0.0 }
 0x25e   : > { %v2819_v4 = vpop.eup %2818  ;;  %377 = vadd.xlane.f32.xlu1 %v376_v63 }
 0x25f   : > { %v379_v7 = vsel %vm312_vm0, %v2819_v4, 0.0 }
 0x260   : > { %v2821_v8 = vpop.eup %2820  ;;  %380 = vadd.xlane.f32.xlu0 %v379_v7 }
 0x261   : > { %v382_v9 = vsel %vm312_vm0, %v2821_v8, 0.0 }
 0x262   : > { %383 = vadd.xlane.f32.xlu1 %v382_v9 }
 0x2e1   : > { %v363_v0 = vpop.xlane.xlu0 %362 }
 0x2e2   : > { %2822 = vrcp.f32 %v363_v0 }
 0x2e3   : > { %v366_v2 = vpop.xlane.xlu1 %365 }
 0x2e4   : > { %2824 = vrcp.f32 %v366_v2 }
 0x2e5   : > { %v369_v5 = vpop.xlane.xlu0 %368 }
 0x2e6   : > { %2826 = vrcp.f32 %v369_v5 }
 0x2e7   : > { %v372_v10 = vpop.xlane.xlu1 %371 }
 0x2e8   : > { %2828 = vrcp.f32 %v372_v10 }
 0x2e9   : > { %v375_v12 = vpop.xlane.xlu0 %374 }
 0x2ea   : > { %2830 = vrcp.f32 %v375_v12 }
 0x2eb   : > { %v378_v13 = vpop.xlane.xlu1 %377 }
 0x2ec   : > { %v2823_v14 = vpop.eup %2822  ;;  %2832 = vrcp.f32 %v378_v13 }
 0x2ed   : > { %v381_v15 = vpop.xlane.xlu0 %380  ;;  %v386_v16 = vmul.f32 %v2823_v14, %v2807_v49 }
 0x2ee   : > { %v2825_v17 = vpop.eup %2824  ;;  %2834 = vrcp.f32 %v381_v15 }
 0x2ef   : > { %v384_v18 = vpop.xlane.xlu1 %383  ;;  %v401_v19 = vsel %vm312_vm0, %v386_v16, 0.0  ;;  %v388_v20 = vmul.f32 %v2825_v17, %v2809_v53 }
 0x2f0   : > { %v2827_v21 = vpop.eup %2826  ;;  %2836 = vrcp.f32 %v384_v18  ;;  %402 = vadd.xlane.f32.xlu0 %v401_v19 }
 0x2f1   : > { %v404_v22 = vsel %vm312_vm0, %v388_v20, 0.0  ;;  %v390_v23 = vmul.f32 %v2827_v21, %v2811_v56 }
 0x2f2   : > { %v2829_v24 = vpop.eup %2828  ;;  %405 = vadd.xlane.f32.xlu1 %v404_v22 }
 0x2f3   : > { %v407_v25 = vsel %vm312_vm0, %v390_v23, 0.0  ;;  %v392_v26 = vmul.f32 %v2829_v24, %v2813_v58 }
 0x2f4   : > { %v2831_v27 = vpop.eup %2830  ;;  %408 = vadd.xlane.f32.xlu0 %v407_v25 }
 0x2f5   : > { %v410_v28 = vsel %vm312_vm0, %v392_v26, 0.0  ;;  %v394_v29 = vmul.f32 %v2831_v27, %v2815_v60 }
 0x2f6   : > { %v2833_v30 = vpop.eup %2832  ;;  %411 = vadd.xlane.f32.xlu1 %v410_v28 }
 0x2f7   : > { %v413_v31 = vsel %vm312_vm0, %v394_v29, 0.0  ;;  %v396_v32 = vmul.f32 %v2833_v30, %v2817_v62 }
 0x2f8   : > { %v2835_v33 = vpop.eup %2834  ;;  %414 = vadd.xlane.f32.xlu0 %v413_v31 }
 0x2f9   : > { %v416_v34 = vsel %vm312_vm0, %v396_v32, 0.0  ;;  %v398_v35 = vmul.f32 %v2835_v33, %v2819_v4 }
 0x2fa   : > { %v2837_v36 = vpop.eup %2836  ;;  %417 = vadd.xlane.f32.xlu1 %v416_v34 }
 0x2fb   : > { %v419_v37 = vsel %vm312_vm0, %v398_v35, 0.0  ;;  %v400_v38 = vmul.f32 %v2837_v36, %v2821_v8 }
 0x2fc   : > { %420 = vadd.xlane.f32.xlu0 %v419_v37 }
 0x2fd   : > { %v422_v39 = vsel %vm312_vm0, %v400_v38, 0.0 }
 0x2fe   : > { %423 = vadd.xlane.f32.xlu1 %v422_v39 }
 0x37d   : > { %v403_v40 = vpop.xlane.xlu0 %402 }
 0x37e   : > { %v425_v41 = vadd.f32 1e-06, %v403_v40 }
 0x37f   : > { %v406_v42 = vpop.xlane.xlu1 %405 }
 0x380   : > { %2838 = vrcp.f32 %v425_v41  ;;  %v426_v43 = vadd.f32 1e-06, %v406_v42 }
 0x381   : > { %v409_v44 = vpop.xlane.xlu0 %408 }
 0x382   : > { %2840 = vrcp.f32 %v426_v43  ;;  %v427_v45 = vadd.f32 1e-06, %v409_v44 }
 0x383   : > { %v412_v46 = vpop.xlane.xlu1 %411 }
 0x384   : > { %2842 = vrcp.f32 %v427_v45  ;;  %v428_v47 = vadd.f32 1e-06, %v412_v46 }
 0x385   : > { %v415_v48 = vpop.xlane.xlu0 %414 }
 0x386   : > { %2844 = vrcp.f32 %v428_v47  ;;  %v429_v49 = vadd.f32 1e-06, %v415_v48 }
 0x387   : > { %v418_v50 = vpop.xlane.xlu1 %417 }
 0x388   : > { %2846 = vrcp.f32 %v429_v49  ;;  %v430_v51 = vadd.f32 1e-06, %v418_v50 }
 0x389   : > { %v421_v52 = vpop.xlane.xlu0 %420 }
 0x38a   : > { %v2839_v53 = vpop.eup %2838  ;;  %2848 = vrcp.f32 %v430_v51  ;;  %v431_v54 = vadd.f32 1e-06, %v421_v52 }
 0x38b   : > { %v424_v55 = vpop.xlane.xlu1 %423  ;;  %v434_v58 = vmul.f32 %v2839_v53, %v386_v16 }
 0x38c   : > { %v2841_v56 = vpop.eup %2840  ;;  %2850 = vrcp.f32 %v431_v54  ;;  %v432_v57 = vadd.f32 1e-06, %v424_v55 }
 0x38d   : > { %v436_v59 = vmul.f32 %v2841_v56, %v388_v20 }
 0x38e   : > { %v2843_v60 = vpop.eup %2842  ;;  %2852 = vrcp.f32 %v432_v57 }
 0x38f   : > { %v449_v61 = vpack.c.bf16 %v436_v59, %v434_v58  ;;  %v438_v63 = vmul.f32 %v2843_v60, %v390_v23 }
 0x390   : > { %v2845_v62 = vpop.eup %2844 }
 0x391   : > { %2548 = vmatprep.mubr.msk.bf16.mxu1 %vm312_vm0, %v449_v61  ;;  %v440_v4 = vmul.f32 %v2845_v62, %v392_v26 }
 0x392   : > { %v2847_v7 = vpop.eup %2846 }
 0x393   : > { %v450_v8 = vpack.c.bf16 %v440_v4, %v438_v63  ;;  %v442_v0 = vmul.f32 %v2847_v7, %v394_v29 }
 0x394   : > { %v2849_v9 = vpop.eup %2848 }
 0x395   : > { %2549 = vmatmul.mubr.msk.bf16.vlgmr.msra.gmra.mrb[0].mxu1 %vm312_vm0, %v450_v8  ;;  %v444_v2 = vmul.f32 %v2849_v9, %v396_v32 }
 0x396   : > { %v2851_v5 = vpop.eup %2850 }
 0x397   : > { %v451_v10 = vpack.c.bf16 %v444_v2, %v442_v0  ;;  %v446_v13 = vmul.f32 %v2851_v5, %v398_v35 }
 0x398   : > { %v2853_v12 = vpop.eup %2852 }
 0x399   : > { %2552 = vmatprep.mubr.msk.bf16.mxu1 %vm312_vm0, %v451_v10  ;;  %v448_v14 = vmul.f32 %v2853_v12, %v400_v38 }
 0x39b   : > { %v452_v15 = vpack.c.bf16 %v448_v14, %v446_v13 }
 0x39d   : > { %2553 = vmatmul.mubr.msk.bf16.gmra.mrb[4].mxu1 %vm312_vm0, %v452_v15 }
 0x39e   : > { %2564 = vmatprep.mubr.bf16.mxu1 %v3492_v6 }
 0x468   : > { %v2550_v16 = vpop.f32.mrb[0].mxu1 }
 0x469   : > { %v499_v17 = vpop.f32.mrb[1].mxu1  ;;  %v532_v22 = vmul.f32 %v2550_v16, %v2550_v16 }
 0x46a   : > { %v2551_v18 = vpop.f32.mrb[2].mxu1  ;;  %v530_v19 = vmul.f32 %v499_v17, %v499_v17 }
 0x46b   : > { %v502_v20 = vpop.f32.mrb[3].mxu1  ;;  %v533_v24 = vmul.f32 %v2551_v18, %v2551_v18 }
 0x46c   : > { %538 = vadd.xlane.f32.xlu0 %v530_v19  ;;  %v531_v21 = vmul.f32 %v502_v20, %v502_v20 }
 0x46e   : > { %540 = vadd.xlane.f32.xlu1 %v531_v21 }
 0x470   : > { %542 = vadd.xlane.f32.xlu0 %v532_v22  ;;  %v2554_v23 = vpop.f32.mrb[4].mxu1 }
 0x471   : > { %v515_v25 = vpop.f32.mrb[5].mxu1  ;;  %v536_v30 = vmul.f32 %v2554_v23, %v2554_v23 }
 0x472   : > { %544 = vadd.xlane.f32.xlu1 %v533_v24  ;;  %v2555_v26 = vpop.f32.mrb[6].mxu1  ;;  %v534_v27 = vmul.f32 %v515_v25, %v515_v25 }
 0x473   : > { %v518_v28 = vpop.f32.mrb[7].mxu1  ;;  %v537_v31 = vmul.f32 %v2555_v26, %v2555_v26 }
 0x474   : > { %546 = vadd.xlane.f32.xlu0 %v534_v27  ;;  %v535_v29 = vmul.f32 %v518_v28, %v518_v28 }
 0x476   : > { %548 = vadd.xlane.f32.xlu1 %v535_v29 }
 0x478   : > { %550 = vadd.xlane.f32.xlu0 %v536_v30 }
 0x47a   : > { %552 = vadd.xlane.f32.xlu1 %v537_v31 }
 0x4f9   : > { %v539_v32 = vpop.xlane.xlu0 %538 }
 0x4fa   : > { %v554_v33 = vmax.f32 %v539_v32, 1e-12 }
 0x4fb   : > { %v541_v34 = vpop.xlane.xlu1 %540 }
 0x4fc   : > { %2854 = vrsqrt.f32 %v554_v33  ;;  %v555_v35 = vmax.f32 %v541_v34, 1e-12 }
 0x4fd   : > { %v543_v36 = vpop.xlane.xlu0 %542 }
 0x4fe   : > { %2856 = vrsqrt.f32 %v555_v35  ;;  %v556_v37 = vmax.f32 %v543_v36, 1e-12 }
 0x4ff   : > { %v545_v38 = vpop.xlane.xlu1 %544 }
 0x500   : > { %2858 = vrsqrt.f32 %v556_v37  ;;  %v557_v39 = vmax.f32 %v545_v38, 1e-12 }
 0x501   : > { %v547_v40 = vpop.xlane.xlu0 %546 }
 0x502   : > { %2860 = vrsqrt.f32 %v557_v39  ;;  %v558_v41 = vmax.f32 %v547_v40, 1e-12 }
 0x503   : > { %v549_v42 = vpop.xlane.xlu1 %548 }
 0x504   : > { %2862 = vrsqrt.f32 %v558_v41  ;;  %v559_v43 = vmax.f32 %v549_v42, 1e-12 }
 0x505   : > { %v551_v44 = vpop.xlane.xlu0 %550 }
 0x506   : > { %v2855_v45 = vpop.eup %2854  ;;  %2864 = vrsqrt.f32 %v559_v43  ;;  %v560_v46 = vmax.f32 %v551_v44, 1e-12 }
 0x507   : > { %v553_v47 = vpop.xlane.xlu1 %552  ;;  %v570_v50 = vmul.f32 %v2855_v45, %v499_v17 }
 0x508   : > { %v2857_v48 = vpop.eup %2856  ;;  %2866 = vrsqrt.f32 %v560_v46  ;;  %v561_v49 = vmax.f32 %v553_v47, 1e-12 }
 0x509   : > { %v571_v51 = vmul.f32 %v2857_v48, %v502_v20 }
 0x50a   : > { %v2859_v52 = vpop.eup %2858  ;;  %2868 = vrsqrt.f32 %v561_v49 }
 0x50b   : > { %v578_v53 = vpack.c.bf16 %v571_v51, %v570_v50  ;;  %v572_v55 = vmul.f32 %v2859_v52, %v2550_v16 }
 0x50c   : > { %v2861_v54 = vpop.eup %2860 }
 0x50d   : > { %2556 = vmatprep.subr.bf16.mxu1 %v578_v53  ;;  %v573_v56 = vmul.f32 %v2861_v54, %v2551_v18 }
 0x50e   : > { %v2863_v57 = vpop.eup %2862  ;;  %2557 = vmatpush3.bf16.xpose.msra.mxu1 %v578_v53 }
 0x50f   : > { %v579_v58 = vpack.c.bf16 %v573_v56, %v572_v55  ;;  %v574_v60 = vmul.f32 %v2863_v57, %v515_v25 }
 0x510   : > { %v2865_v59 = vpop.eup %2864 }
 0x511   : > { %2558 = vmatprep.subr.bf16.mxu1 %v579_v58  ;;  %v575_v61 = vmul.f32 %v2865_v59, %v518_v28 }
 0x512   : > { %v2867_v62 = vpop.eup %2866 }
 0x513   : > { %v580_v63 = vpack.c.bf16 %v575_v61, %v574_v60  ;;  %v576_v7 = vmul.f32 %v2867_v62, %v2554_v23 }
 0x514   : > { %v2869_v4 = vpop.eup %2868 }
 0x515   : > { %v577_v8 = vmul.f32 %v2869_v4, %v2555_v26 }
 0x516   : > { %2559 = vmatpush3.bf16.xpose.msra.mxu1 %v579_v58 }
 0x517   : > { %2560 = vmatprep.subr.bf16.mxu1 %v580_v63  ;;  %v581_v9 = vpack.c.bf16 %v577_v8, %v576_v7 }
 0x51e   : > { %2561 = vmatpush3.bf16.xpose.msra.mxu1 %v580_v63 }
 0x51f   : > { %2562 = vmatprep.subr.bf16.mxu1 %v581_v9 }
 0x526   : > { %2563 = vmatpush3.bf16.xpose.msra.mxu1 %v581_v9 }
 0x527   : > { %2604 = vmatprep.subr.bf16.mxu1 %v3492_v6 }
 0x52d   : > { %2565 = vmatmul.mubr.bf16.vlgmr.msra.gmra.mrb[8].mxu1 %v3490_v3 }
 0x52e   : > { %2568 = vmatprep.mubr.bf16.mxu1 %v3500_v1  ;;  %2605 = vmatpush3.bf16.msra.mxu1 %v3492_v6 }
 0x52f   : > { %2606 = vmatprep.subr.bf16.mxu1 %v3490_v3 }
 0x532   : > { %2607 = vmatpush3.bf16.msra.mxu1 %v3490_v3 }
 0x533   : > { %2608 = vmatprep.subr.bf16.mxu1 %v3500_v1 }
 0x535   : > { %2569 = vmatmul.mubr.bf16.gmra.mrb[12].mxu1 %v3509_v11 }
 0x536   : > { %2609 = vmatpush3.bf16.msra.mxu1 %v3500_v1 }
 0x537   : > { %2610 = vmatprep.subr.bf16.mxu1 %v3509_v11 }
 0x53a   : > { %2611 = vmatpush3.bf16.msra.mxu1 %v3509_v11 }
 0x600   : > { %v2566_v0 = vpop.f32.mrb[8].mxu1 }
 0x601   : > { %v616_v2 = vpop.f32.mrb[9].mxu1  ;;  %v653_v14 = vsel %vm312_vm0, %v2566_v0, -inf }
 0x602   : > { %v2567_v5 = vpop.f32.mrb[10].mxu1  ;;  %v647_v10 = vsel %vm312_vm0, %v616_v2, -inf }
 0x603   : > { %648 = vmax.xlane.f32.xlu0 %v647_v10  ;;  %v619_v12 = vpop.f32.mrb[11].mxu1  ;;  %v656_v16 = vsel %vm312_vm0, %v2567_v5, -inf }
 0x604   : > { %v650_v13 = vsel %vm312_vm0, %v619_v12, -inf }
 0x605   : > { %651 = vmax.xlane.f32.xlu1 %v650_v13 }
 0x607   : > { %654 = vmax.xlane.f32.xlu0 %v653_v14 }
 0x608   : > { %v2570_v15 = vpop.f32.mrb[12].mxu1 }
 0x609   : > { %657 = vmax.xlane.f32.xlu1 %v656_v16  ;;  %v632_v17 = vpop.f32.mrb[13].mxu1  ;;  %v665_v22 = vsel %vm312_vm0, %v2570_v15, -inf }
 0x60a   : > { %v2571_v18 = vpop.f32.mrb[14].mxu1  ;;  %v659_v19 = vsel %vm312_vm0, %v632_v17, -inf }
 0x60b   : > { %660 = vmax.xlane.f32.xlu0 %v659_v19  ;;  %v635_v20 = vpop.f32.mrb[15].mxu1  ;;  %v668_v23 = vsel %vm312_vm0, %v2571_v18, -inf }
 0x60c   : > { %v662_v21 = vsel %vm312_vm0, %v635_v20, -inf }
 0x60d   : > { %663 = vmax.xlane.f32.xlu1 %v662_v21 }
 0x60f   : > { %666 = vmax.xlane.f32.xlu0 %v665_v22 }
 0x611   : > { %669 = vmax.xlane.f32.xlu1 %v668_v23 }
 0x690   : > { %v649_v24 = vpop.xlane.xlu0 %648 }
 0x691   : > { %v671_v25 = vsub.f32 %v616_v2, %v649_v24 }
 0x692   : > { %v652_v26 = vpop.xlane.xlu1 %651 }
 0x693   : > { %v679_v27 = vmul.f32 1.442695, %v671_v25  ;;  %v672_v28 = vsub.f32 %v619_v12, %v652_v26 }
 0x694   : > { %v655_v29 = vpop.xlane.xlu0 %654 }
 0x695   : > { %2870 = vpow2.f32 %v679_v27  ;;  %v681_v30 = vmul.f32 1.442695, %v672_v28  ;;  %v673_v31 = vsub.f32 %v2566_v0, %v655_v29 }
 0x696   : > { %v658_v32 = vpop.xlane.xlu1 %657 }
 0x697   : > { %2872 = vpow2.f32 %v681_v30  ;;  %v683_v33 = vmul.f32 1.442695, %v673_v31  ;;  %v674_v34 = vsub.f32 %v2567_v5, %v658_v32 }
 0x698   : > { %v661_v35 = vpop.xlane.xlu0 %660 }
 0x699   : > { %2874 = vpow2.f32 %v683_v33  ;;  %v685_v36 = vmul.f32 1.442695, %v674_v34  ;;  %v675_v37 = vsub.f32 %v632_v17, %v661_v35 }
 0x69a   : > { %v664_v38 = vpop.xlane.xlu1 %663 }
 0x69b   : > { %2876 = vpow2.f32 %v685_v36  ;;  %v687_v39 = vmul.f32 1.442695, %v675_v37  ;;  %v676_v40 = vsub.f32 %v635_v20, %v664_v38 }
 0x69c   : > { %v667_v41 = vpop.xlane.xlu0 %666 }
 0x69d   : > { %2878 = vpow2.f32 %v687_v39  ;;  %v689_v42 = vmul.f32 1.442695, %v676_v40  ;;  %v677_v43 = vsub.f32 %v2570_v15, %v667_v41 }
 0x69e   : > { %v670_v44 = vpop.xlane.xlu1 %669 }
 0x69f   : > { %v2871_v45 = vpop.eup %2870  ;;  %2880 = vpow2.f32 %v689_v42  ;;  %v691_v46 = vmul.f32 1.442695, %v677_v43  ;;  %v678_v47 = vsub.f32 %v2571_v18, %v670_v44 }
 0x6a0   : > { %v695_v48 = vsel %vm312_vm0, %v2871_v45, 0.0 }
 0x6a1   : > { %v2873_v49 = vpop.eup %2872  ;;  %2882 = vpow2.f32 %v691_v46  ;;  %v693_v50 = vmul.f32 1.442695, %v678_v47  ;;  %696 = vadd.xlane.f32.xlu0 %v695_v48 }
 0x6a2   : > { %v698_v51 = vsel %vm312_vm0, %v2873_v49, 0.0 }
 0x6a3   : > { %v2875_v52 = vpop.eup %2874  ;;  %2884 = vpow2.f32 %v693_v50  ;;  %699 = vadd.xlane.f32.xlu1 %v698_v51 }
 0x6a4   : > { %v701_v53 = vsel %vm312_vm0, %v2875_v52, 0.0 }
 0x6a5   : > { %v2877_v54 = vpop.eup %2876  ;;  %702 = vadd.xlane.f32.xlu0 %v701_v53 }
 0x6a6   : > { %v704_v55 = vsel %vm312_vm0, %v2877_v54, 0.0 }
 0x6a7   : > { %v2879_v56 = vpop.eup %2878  ;;  %705 = vadd.xlane.f32.xlu1 %v704_v55 }
 0x6a8   : > { %v707_v57 = vsel %vm312_vm0, %v2879_v56, 0.0 }
 0x6a9   : > { %v2881_v58 = vpop.eup %2880  ;;  %708 = vadd.xlane.f32.xlu0 %v707_v57 }
 0x6aa   : > { %v710_v59 = vsel %vm312_vm0, %v2881_v58, 0.0 }
 0x6ab   : > { %v2883_v60 = vpop.eup %2882  ;;  %711 = vadd.xlane.f32.xlu1 %v710_v59 }
 0x6ac   : > { %v713_v61 = vsel %vm312_vm0, %v2883_v60, 0.0 }
 0x6ad   : > { %v2885_v62 = vpop.eup %2884  ;;  %714 = vadd.xlane.f32.xlu0 %v713_v61 }
 0x6ae   : > { %v716_v63 = vsel %vm312_vm0, %v2885_v62, 0.0 }
 0x6af   : > { %717 = vadd.xlane.f32.xlu1 %v716_v63 }
 0x72e   : > { %v697_v4 = vpop.xlane.xlu0 %696 }
 0x72f   : > { %2886 = vrcp.f32 %v697_v4 }
 0x730   : > { %v700_v7 = vpop.xlane.xlu1 %699 }
 0x731   : > { %2888 = vrcp.f32 %v700_v7 }
 0x732   : > { %v703_v8 = vpop.xlane.xlu0 %702 }
 0x733   : > { %2890 = vrcp.f32 %v703_v8 }
 0x734   : > { %v706_v9 = vpop.xlane.xlu1 %705 }
 0x735   : > { %2892 = vrcp.f32 %v706_v9 }
 0x736   : > { %v709_v0 = vpop.xlane.xlu0 %708 }
 0x737   : > { %2894 = vrcp.f32 %v709_v0 }
 0x738   : > { %v712_v2 = vpop.xlane.xlu1 %711 }
 0x739   : > { %v2887_v5 = vpop.eup %2886  ;;  %2896 = vrcp.f32 %v712_v2 }
 0x73a   : > { %v715_v10 = vpop.xlane.xlu0 %714  ;;  %v720_v12 = vmul.f32 %v2887_v5, %v2871_v45 }
 0x73b   : > { %v2889_v13 = vpop.eup %2888  ;;  %2898 = vrcp.f32 %v715_v10 }
 0x73c   : > { %v718_v14 = vpop.xlane.xlu1 %717  ;;  %v735_v15 = vsel %vm312_vm0, %v720_v12, 0.0  ;;  %v722_v16 = vmul.f32 %v2889_v13, %v2873_v49 }
 0x73d   : > { %v2891_v17 = vpop.eup %2890  ;;  %2900 = vrcp.f32 %v718_v14  ;;  %736 = vadd.xlane.f32.xlu0 %v735_v15 }
 0x73e   : > { %v738_v18 = vsel %vm312_vm0, %v722_v16, 0.0  ;;  %v724_v19 = vmul.f32 %v2891_v17, %v2875_v52 }
 0x73f   : > { %v2893_v20 = vpop.eup %2892  ;;  %739 = vadd.xlane.f32.xlu1 %v738_v18 }
 0x740   : > { %v741_v21 = vsel %vm312_vm0, %v724_v19, 0.0  ;;  %v726_v22 = vmul.f32 %v2893_v20, %v2877_v54 }
 0x741   : > { %v2895_v23 = vpop.eup %2894  ;;  %742 = vadd.xlane.f32.xlu0 %v741_v21 }
 0x742   : > { %v744_v24 = vsel %vm312_vm0, %v726_v22, 0.0  ;;  %v728_v25 = vmul.f32 %v2895_v23, %v2879_v56 }
 0x743   : > { %v2897_v26 = vpop.eup %2896  ;;  %745 = vadd.xlane.f32.xlu1 %v744_v24 }
 0x744   : > { %v747_v27 = vsel %vm312_vm0, %v728_v25, 0.0  ;;  %v730_v28 = vmul.f32 %v2897_v26, %v2881_v58 }
 0x745   : > { %v2899_v29 = vpop.eup %2898  ;;  %748 = vadd.xlane.f32.xlu0 %v747_v27 }
 0x746   : > { %v750_v30 = vsel %vm312_vm0, %v730_v28, 0.0  ;;  %v732_v31 = vmul.f32 %v2899_v29, %v2883_v60 }
 0x747   : > { %v2901_v32 = vpop.eup %2900  ;;  %751 = vadd.xlane.f32.xlu1 %v750_v30 }
 0x748   : > { %v753_v33 = vsel %vm312_vm0, %v732_v31, 0.0  ;;  %v734_v34 = vmul.f32 %v2901_v32, %v2885_v62 }
 0x749   : > { %754 = vadd.xlane.f32.xlu0 %v753_v33 }
 0x74a   : > { %v756_v35 = vsel %vm312_vm0, %v734_v34, 0.0 }
 0x74b   : > { %757 = vadd.xlane.f32.xlu1 %v756_v35 }
 0x7ca   : > { %v737_v36 = vpop.xlane.xlu0 %736 }
 0x7cb   : > { %v759_v37 = vadd.f32 1e-06, %v737_v36 }
 0x7cc   : > { %v740_v38 = vpop.xlane.xlu1 %739 }
 0x7cd   : > { %2902 = vrcp.f32 %v759_v37  ;;  %v760_v39 = vadd.f32 1e-06, %v740_v38 }
 0x7ce   : > { %v743_v40 = vpop.xlane.xlu0 %742 }
 0x7cf   : > { %2904 = vrcp.f32 %v760_v39  ;;  %v761_v41 = vadd.f32 1e-06, %v743_v40 }
 0x7d0   : > { %v746_v42 = vpop.xlane.xlu1 %745 }
 0x7d1   : > { %2906 = vrcp.f32 %v761_v41  ;;  %v762_v43 = vadd.f32 1e-06, %v746_v42 }
 0x7d2   : > { %v749_v44 = vpop.xlane.xlu0 %748 }
 0x7d3   : > { %2908 = vrcp.f32 %v762_v43  ;;  %v763_v45 = vadd.f32 1e-06, %v749_v44 }
 0x7d4   : > { %v752_v46 = vpop.xlane.xlu1 %751 }
 0x7d5   : > { %2910 = vrcp.f32 %v763_v45  ;;  %v764_v47 = vadd.f32 1e-06, %v752_v46 }
 0x7d6   : > { %v755_v48 = vpop.xlane.xlu0 %754 }
 0x7d7   : > { %v2903_v49 = vpop.eup %2902  ;;  %2912 = vrcp.f32 %v764_v47  ;;  %v765_v50 = vadd.f32 1e-06, %v755_v48 }
 0x7d8   : > { %v758_v51 = vpop.xlane.xlu1 %757  ;;  %v768_v54 = vmul.f32 %v2903_v49, %v720_v12 }
 0x7d9   : > { %v2905_v52 = vpop.eup %2904  ;;  %2914 = vrcp.f32 %v765_v50  ;;  %v766_v53 = vadd.f32 1e-06, %v758_v51 }
 0x7da   : > { %v770_v55 = vmul.f32 %v2905_v52, %v722_v16 }
 0x7db   : > { %v2907_v56 = vpop.eup %2906  ;;  %2916 = vrcp.f32 %v766_v53 }
 0x7dc   : > { %v783_v57 = vpack.c.bf16 %v770_v55, %v768_v54  ;;  %v772_v59 = vmul.f32 %v2907_v56, %v724_v19 }
 0x7dd   : > { %v2909_v58 = vpop.eup %2908 }
 0x7de   : > { %v774_v60 = vmul.f32 %v2909_v58, %v726_v22  ;;  %2580 = vmatprep.mubr.msk.bf16.mxu0 %vm312_vm0, %v783_v57 }
 0x7df   : > { %v2911_v61 = vpop.eup %2910 }
 0x7e0   : > { %v784_v62 = vpack.c.bf16 %v774_v60, %v772_v59  ;;  %v776_v4 = vmul.f32 %v2911_v61, %v728_v25 }
 0x7e1   : > { %v2913_v63 = vpop.eup %2912 }
 0x7e2   : > { %2581 = vmatmul.mubr.msk.bf16.vlgmr.msra.gmra.mrb[8].mxu0 %vm312_vm0, %v784_v62  ;;  %v778_v7 = vmul.f32 %v2913_v63, %v730_v28 }
 0x7e3   : > { %v2915_v8 = vpop.eup %2914 }
 0x7e4   : > { %v785_v9 = vpack.c.bf16 %v778_v7, %v776_v4  ;;  %v780_v2 = vmul.f32 %v2915_v8, %v732_v31 }
 0x7e5   : > { %v2917_v0 = vpop.eup %2916 }
 0x7e6   : > { %2584 = vmatprep.mubr.msk.bf16.mxu0 %vm312_vm0, %v785_v9  ;;  %v782_v5 = vmul.f32 %v2917_v0, %v734_v34 }
 0x7e8   : > { %v786_v10 = vpack.c.bf16 %v782_v5, %v780_v2 }
 0x7ea   : > { %2585 = vmatmul.mubr.msk.bf16.gmra.mrb[12].mxu0 %vm312_vm0, %v786_v10 }
 0x7eb   : > { %2596 = vmatprep.mubr.bf16.mxu0 %v3492_v6 }
 0x8b5   : > { %v2582_v12 = vpop.f32.mrb[8].mxu0 }
 0x8b6   : > { %v833_v13 = vpop.f32.mrb[9].mxu0  ;;  %v866_v18 = vmul.f32 %v2582_v12, %v2582_v12 }
 0x8b7   : > { %v2583_v14 = vpop.f32.mrb[10].mxu0  ;;  %v864_v15 = vmul.f32 %v833_v13, %v833_v13 }
 0x8b8   : > { %v836_v16 = vpop.f32.mrb[11].mxu0  ;;  %v867_v20 = vmul.f32 %v2583_v14, %v2583_v14 }
 0x8b9   : > { %872 = vadd.xlane.f32.xlu0 %v864_v15  ;;  %v865_v17 = vmul.f32 %v836_v16, %v836_v16 }
 0x8bb   : > { %874 = vadd.xlane.f32.xlu1 %v865_v17 }
 0x8bd   : > { %876 = vadd.xlane.f32.xlu0 %v866_v18  ;;  %v2586_v19 = vpop.f32.mrb[12].mxu0 }
 0x8be   : > { %v849_v21 = vpop.f32.mrb[13].mxu0  ;;  %v870_v26 = vmul.f32 %v2586_v19, %v2586_v19 }
 0x8bf   : > { %878 = vadd.xlane.f32.xlu1 %v867_v20  ;;  %v2587_v22 = vpop.f32.mrb[14].mxu0  ;;  %v868_v23 = vmul.f32 %v849_v21, %v849_v21 }
 0x8c0   : > { %v852_v24 = vpop.f32.mrb[15].mxu0  ;;  %v871_v27 = vmul.f32 %v2587_v22, %v2587_v22 }
 0x8c1   : > { %880 = vadd.xlane.f32.xlu0 %v868_v23  ;;  %v869_v25 = vmul.f32 %v852_v24, %v852_v24 }
 0x8c3   : > { %882 = vadd.xlane.f32.xlu1 %v869_v25 }
 0x8c5   : > { %884 = vadd.xlane.f32.xlu0 %v870_v26 }
 0x8c7   : > { %886 = vadd.xlane.f32.xlu1 %v871_v27 }
 0x946   : > { %v873_v28 = vpop.xlane.xlu0 %872 }
 0x947   : > { %v888_v29 = vmax.f32 %v873_v28, 1e-12 }
 0x948   : > { %v875_v30 = vpop.xlane.xlu1 %874 }
 0x949   : > { %2918 = vrsqrt.f32 %v888_v29  ;;  %v889_v31 = vmax.f32 %v875_v30, 1e-12 }
 0x94a   : > { %v877_v32 = vpop.xlane.xlu0 %876 }
 0x94b   : > { %2920 = vrsqrt.f32 %v889_v31  ;;  %v890_v33 = vmax.f32 %v877_v32, 1e-12 }
 0x94c   : > { %v879_v34 = vpop.xlane.xlu1 %878 }
 0x94d   : > { %2922 = vrsqrt.f32 %v890_v33  ;;  %v891_v35 = vmax.f32 %v879_v34, 1e-12 }
 0x94e   : > { %v881_v36 = vpop.xlane.xlu0 %880 }
 0x94f   : > { %2924 = vrsqrt.f32 %v891_v35  ;;  %v892_v37 = vmax.f32 %v881_v36, 1e-12 }
 0x950   : > { %v883_v38 = vpop.xlane.xlu1 %882 }
 0x951   : > { %2926 = vrsqrt.f32 %v892_v37  ;;  %v893_v39 = vmax.f32 %v883_v38, 1e-12 }
 0x952   : > { %v885_v40 = vpop.xlane.xlu0 %884 }
 0x953   : > { %v2919_v41 = vpop.eup %2918  ;;  %2928 = vrsqrt.f32 %v893_v39  ;;  %v894_v42 = vmax.f32 %v885_v40, 1e-12 }
 0x954   : > { %v887_v43 = vpop.xlane.xlu1 %886  ;;  %v904_v46 = vmul.f32 %v2919_v41, %v833_v13 }
 0x955   : > { %v2921_v44 = vpop.eup %2920  ;;  %2930 = vrsqrt.f32 %v894_v42  ;;  %v895_v45 = vmax.f32 %v887_v43, 1e-12 }
 0x956   : > { %v905_v47 = vmul.f32 %v2921_v44, %v836_v16 }
 0x957   : > { %v2923_v48 = vpop.eup %2922  ;;  %2932 = vrsqrt.f32 %v895_v45 }
 0x958   : > { %v912_v49 = vpack.c.bf16 %v905_v47, %v904_v46  ;;  %v906_v51 = vmul.f32 %v2923_v48, %v2582_v12 }
 0x959   : > { %v2925_v50 = vpop.eup %2924 }
 0x95a   : > { %2588 = vmatprep.subr.bf16.mxu0 %v912_v49  ;;  %v907_v52 = vmul.f32 %v2925_v50, %v2583_v14 }
 0x95b   : > { %v2927_v53 = vpop.eup %2926  ;;  %2589 = vmatpush3.bf16.xpose.msra.mxu0 %v912_v49 }
 0x95c   : > { %v913_v54 = vpack.c.bf16 %v907_v52, %v906_v51  ;;  %v908_v56 = vmul.f32 %v2927_v53, %v849_v21 }
 0x95d   : > { %v2929_v55 = vpop.eup %2928 }
 0x95e   : > { %2590 = vmatprep.subr.bf16.mxu0 %v913_v54  ;;  %v909_v57 = vmul.f32 %v2929_v55, %v852_v24 }
 0x95f   : > { %v2931_v58 = vpop.eup %2930 }
 0x960   : > { %v914_v59 = vpack.c.bf16 %v909_v57, %v908_v56  ;;  %v910_v61 = vmul.f32 %v2931_v58, %v2586_v19 }
 0x961   : > { %v2933_v60 = vpop.eup %2932 }
 0x962   : > { %v911_v62 = vmul.f32 %v2933_v60, %v2587_v22 }
 0x963   : > { %2591 = vmatpush3.bf16.xpose.msra.mxu0 %v913_v54 }
 0x964   : > { %2592 = vmatprep.subr.bf16.mxu0 %v914_v59  ;;  %v915_v63 = vpack.c.bf16 %v911_v62, %v910_v61 }
 0x96b   : > { %2593 = vmatpush3.bf16.xpose.msra.mxu0 %v914_v59 }
 0x96c   : > { %2594 = vmatprep.subr.bf16.mxu0 %v915_v63 }
 0x973   : > { %2595 = vmatpush3.bf16.xpose.msra.mxu0 %v915_v63 }
 0x974   : > { %2636 = vmatprep.subr.bf16.mxu0 %v3492_v6 }
 0x97a   : > { %2597 = vmatmul.mubr.bf16.vlgmr.msra.gmra.mrb[16].mxu0 %v3490_v3 }
 0x97b   : > { %2600 = vmatprep.mubr.bf16.mxu0 %v3500_v1  ;;  %2637 = vmatpush3.bf16.msra.mxu0 %v3492_v6 }
 0x97c   : > { %2638 = vmatprep.subr.bf16.mxu0 %v3490_v3 }
 0x97f   : > { %2639 = vmatpush3.bf16.msra.mxu0 %v3490_v3 }
 0x980   : > { %2640 = vmatprep.subr.bf16.mxu0 %v3500_v1 }
 0x982   : > { %2601 = vmatmul.mubr.bf16.gmra.mrb[20].mxu0 %v3509_v11 }
 0x983   : > { %2641 = vmatpush3.bf16.msra.mxu0 %v3500_v1 }
 0x984   : > { %2642 = vmatprep.subr.bf16.mxu0 %v3509_v11 }
 0x987   : > { %2643 = vmatpush3.bf16.msra.mxu0 %v3509_v11 }
 0xa4d   : > { %v2598_v4 = vpop.f32.mrb[16].mxu0 }
 0xa4e   : > { %v950_v7 = vpop.f32.mrb[17].mxu0  ;;  %v987_v5 = vsel %vm312_vm0, %v2598_v4, -inf }
 0xa4f   : > { %v2599_v8 = vpop.f32.mrb[18].mxu0  ;;  %v981_v9 = vsel %vm312_vm0, %v950_v7, -inf }
 0xa50   : > { %982 = vmax.xlane.f32.xlu0 %v981_v9  ;;  %v953_v0 = vpop.f32.mrb[19].mxu0  ;;  %v990_v12 = vsel %vm312_vm0, %v2599_v8, -inf }
 0xa51   : > { %v984_v2 = vsel %vm312_vm0, %v953_v0, -inf }
 0xa52   : > { %985 = vmax.xlane.f32.xlu1 %v984_v2 }
 0xa54   : > { %988 = vmax.xlane.f32.xlu0 %v987_v5 }
 0xa55   : > { %v2602_v10 = vpop.f32.mrb[20].mxu0 }
 0xa56   : > { %991 = vmax.xlane.f32.xlu1 %v990_v12  ;;  %v966_v13 = vpop.f32.mrb[21].mxu0  ;;  %v999_v18 = vsel %vm312_vm0, %v2602_v10, -inf }
 0xa57   : > { %v2603_v14 = vpop.f32.mrb[22].mxu0  ;;  %v993_v15 = vsel %vm312_vm0, %v966_v13, -inf }
 0xa58   : > { %994 = vmax.xlane.f32.xlu0 %v993_v15  ;;  %v969_v16 = vpop.f32.mrb[23].mxu0  ;;  %v1002_v19 = vsel %vm312_vm0, %v2603_v14, -inf }
 0xa59   : > { %v996_v17 = vsel %vm312_vm0, %v969_v16, -inf }
 0xa5a   : > { %997 = vmax.xlane.f32.xlu1 %v996_v17 }
 0xa5c   : > { %1000 = vmax.xlane.f32.xlu0 %v999_v18 }
 0xa5e   : > { %1003 = vmax.xlane.f32.xlu1 %v1002_v19 }
 0xadd   : > { %v983_v20 = vpop.xlane.xlu0 %982 }
 0xade   : > { %v1005_v21 = vsub.f32 %v950_v7, %v983_v20 }
 0xadf   : > { %v986_v22 = vpop.xlane.xlu1 %985 }
 0xae0   : > { %v1013_v23 = vmul.f32 1.442695, %v1005_v21  ;;  %v1006_v24 = vsub.f32 %v953_v0, %v986_v22 }
 0xae1   : > { %v989_v25 = vpop.xlane.xlu0 %988 }
 0xae2   : > { %2934 = vpow2.f32 %v1013_v23  ;;  %v1015_v26 = vmul.f32 1.442695, %v1006_v24  ;;  %v1007_v27 = vsub.f32 %v2598_v4, %v989_v25 }
 0xae3   : > { %v992_v28 = vpop.xlane.xlu1 %991 }
 0xae4   : > { %2936 = vpow2.f32 %v1015_v26  ;;  %v1017_v29 = vmul.f32 1.442695, %v1007_v27  ;;  %v1008_v30 = vsub.f32 %v2599_v8, %v992_v28 }
 0xae5   : > { %v995_v31 = vpop.xlane.xlu0 %994 }
 0xae6   : > { %2938 = vpow2.f32 %v1017_v29  ;;  %v1019_v32 = vmul.f32 1.442695, %v1008_v30  ;;  %v1009_v33 = vsub.f32 %v966_v13, %v995_v31 }
 0xae7   : > { %v998_v34 = vpop.xlane.xlu1 %997 }
 0xae8   : > { %2940 = vpow2.f32 %v1019_v32  ;;  %v1021_v35 = vmul.f32 1.442695, %v1009_v33  ;;  %v1010_v36 = vsub.f32 %v969_v16, %v998_v34 }
 0xae9   : > { %v1001_v37 = vpop.xlane.xlu0 %1000 }
 0xaea   : > { %2942 = vpow2.f32 %v1021_v35  ;;  %v1023_v38 = vmul.f32 1.442695, %v1010_v36  ;;  %v1011_v39 = vsub.f32 %v2602_v10, %v1001_v37 }
 0xaeb   : > { %v1004_v40 = vpop.xlane.xlu1 %1003 }
 0xaec   : > { %v2935_v41 = vpop.eup %2934  ;;  %2944 = vpow2.f32 %v1023_v38  ;;  %v1025_v42 = vmul.f32 1.442695, %v1011_v39  ;;  %v1012_v43 = vsub.f32 %v2603_v14, %v1004_v40 }
 0xaed   : > { %v1029_v44 = vsel %vm312_vm0, %v2935_v41, 0.0 }
 0xaee   : > { %v2937_v45 = vpop.eup %2936  ;;  %2946 = vpow2.f32 %v1025_v42  ;;  %v1027_v46 = vmul.f32 1.442695, %v1012_v43  ;;  %1030 = vadd.xlane.f32.xlu0 %v1029_v44 }
 0xaef   : > { %v1032_v47 = vsel %vm312_vm0, %v2937_v45, 0.0 }
 0xaf0   : > { %v2939_v48 = vpop.eup %2938  ;;  %2948 = vpow2.f32 %v1027_v46  ;;  %1033 = vadd.xlane.f32.xlu1 %v1032_v47 }
 0xaf1   : > { %v1035_v49 = vsel %vm312_vm0, %v2939_v48, 0.0 }
 0xaf2   : > { %v2941_v50 = vpop.eup %2940  ;;  %1036 = vadd.xlane.f32.xlu0 %v1035_v49 }
 0xaf3   : > { %v1038_v51 = vsel %vm312_vm0, %v2941_v50, 0.0 }
 0xaf4   : > { %v2943_v52 = vpop.eup %2942  ;;  %1039 = vadd.xlane.f32.xlu1 %v1038_v51 }
 0xaf5   : > { %v1041_v53 = vsel %vm312_vm0, %v2943_v52, 0.0 }
 0xaf6   : > { %v2945_v54 = vpop.eup %2944  ;;  %1042 = vadd.xlane.f32.xlu0 %v1041_v53 }
 0xaf7   : > { %v1044_v55 = vsel %vm312_vm0, %v2945_v54, 0.0 }
 0xaf8   : > { %v2947_v56 = vpop.eup %2946  ;;  %1045 = vadd.xlane.f32.xlu1 %v1044_v55 }
 0xaf9   : > { %v1047_v57 = vsel %vm312_vm0, %v2947_v56, 0.0 }
 0xafa   : > { %v2949_v58 = vpop.eup %2948  ;;  %1048 = vadd.xlane.f32.xlu0 %v1047_v57 }
 0xafb   : > { %v1050_v59 = vsel %vm312_vm0, %v2949_v58, 0.0 }
 0xafc   : > { %1051 = vadd.xlane.f32.xlu1 %v1050_v59 }
 0xb7b   : > { %v1031_v60 = vpop.xlane.xlu0 %1030 }
 0xb7c   : > { %2950 = vrcp.f32 %v1031_v60 }
 0xb7d   : > { %v1034_v61 = vpop.xlane.xlu1 %1033 }
 0xb7e   : > { %2952 = vrcp.f32 %v1034_v61 }
 0xb7f   : > { %v1037_v62 = vpop.xlane.xlu0 %1036 }
 0xb80   : > { %2954 = vrcp.f32 %v1037_v62 }
 0xb81   : > { %v1040_v63 = vpop.xlane.xlu1 %1039 }
 0xb82   : > { %2956 = vrcp.f32 %v1040_v63 }
 0xb83   : > { %v1043_v4 = vpop.xlane.xlu0 %1042 }
 0xb84   : > { %2958 = vrcp.f32 %v1043_v4 }
 0xb85   : > { %v1046_v7 = vpop.xlane.xlu1 %1045 }
 0xb86   : > { %v2951_v8 = vpop.eup %2950  ;;  %2960 = vrcp.f32 %v1046_v7 }
 0xb87   : > { %v1049_v9 = vpop.xlane.xlu0 %1048  ;;  %v1054_v0 = vmul.f32 %v2951_v8, %v2935_v41 }
 0xb88   : > { %v2953_v2 = vpop.eup %2952  ;;  %2962 = vrcp.f32 %v1049_v9 }
 0xb89   : > { %v1052_v5 = vpop.xlane.xlu1 %1051  ;;  %v1069_v10 = vsel %vm312_vm0, %v1054_v0, 0.0  ;;  %v1056_v12 = vmul.f32 %v2953_v2, %v2937_v45 }
 0xb8a   : > { %v2955_v13 = vpop.eup %2954  ;;  %2964 = vrcp.f32 %v1052_v5  ;;  %1070 = vadd.xlane.f32.xlu0 %v1069_v10 }
 0xb8b   : > { %v1072_v14 = vsel %vm312_vm0, %v1056_v12, 0.0  ;;  %v1058_v15 = vmul.f32 %v2955_v13, %v2939_v48 }
 0xb8c   : > { %v2957_v16 = vpop.eup %2956  ;;  %1073 = vadd.xlane.f32.xlu1 %v1072_v14 }
 0xb8d   : > { %v1075_v17 = vsel %vm312_vm0, %v1058_v15, 0.0  ;;  %v1060_v18 = vmul.f32 %v2957_v16, %v2941_v50 }
 0xb8e   : > { %v2959_v19 = vpop.eup %2958  ;;  %1076 = vadd.xlane.f32.xlu0 %v1075_v17 }
 0xb8f   : > { %v1078_v20 = vsel %vm312_vm0, %v1060_v18, 0.0  ;;  %v1062_v21 = vmul.f32 %v2959_v19, %v2943_v52 }
 0xb90   : > { %v2961_v22 = vpop.eup %2960  ;;  %1079 = vadd.xlane.f32.xlu1 %v1078_v20 }
 0xb91   : > { %v1081_v23 = vsel %vm312_vm0, %v1062_v21, 0.0  ;;  %v1064_v24 = vmul.f32 %v2961_v22, %v2945_v54 }
 0xb92   : > { %v2963_v25 = vpop.eup %2962  ;;  %1082 = vadd.xlane.f32.xlu0 %v1081_v23 }
 0xb93   : > { %v1084_v26 = vsel %vm312_vm0, %v1064_v24, 0.0  ;;  %v1066_v27 = vmul.f32 %v2963_v25, %v2947_v56 }
 0xb94   : > { %v2965_v28 = vpop.eup %2964  ;;  %1085 = vadd.xlane.f32.xlu1 %v1084_v26 }
 0xb95   : > { %v1087_v29 = vsel %vm312_vm0, %v1066_v27, 0.0  ;;  %v1068_v30 = vmul.f32 %v2965_v28, %v2949_v58 }
 0xb96   : > { %1088 = vadd.xlane.f32.xlu0 %v1087_v29 }
 0xb97   : > { %v1090_v31 = vsel %vm312_vm0, %v1068_v30, 0.0 }
 0xb98   : > { %1091 = vadd.xlane.f32.xlu1 %v1090_v31 }
 0xc17   : > { %v1071_v32 = vpop.xlane.xlu0 %1070 }
 0xc18   : > { %v1093_v33 = vadd.f32 1e-06, %v1071_v32 }
 0xc19   : > { %v1074_v34 = vpop.xlane.xlu1 %1073 }
 0xc1a   : > { %2966 = vrcp.f32 %v1093_v33  ;;  %v1094_v35 = vadd.f32 1e-06, %v1074_v34 }
 0xc1b   : > { %v1077_v36 = vpop.xlane.xlu0 %1076 }
 0xc1c   : > { %2968 = vrcp.f32 %v1094_v35  ;;  %v1095_v37 = vadd.f32 1e-06, %v1077_v36 }
 0xc1d   : > { %v1080_v38 = vpop.xlane.xlu1 %1079 }
 0xc1e   : > { %2970 = vrcp.f32 %v1095_v37  ;;  %v1096_v39 = vadd.f32 1e-06, %v1080_v38 }
 0xc1f   : > { %v1083_v40 = vpop.xlane.xlu0 %1082 }
 0xc20   : > { %2972 = vrcp.f32 %v1096_v39  ;;  %v1097_v41 = vadd.f32 1e-06, %v1083_v40 }
 0xc21   : > { %v1086_v42 = vpop.xlane.xlu1 %1085 }
 0xc22   : > { %2974 = vrcp.f32 %v1097_v41  ;;  %v1098_v43 = vadd.f32 1e-06, %v1086_v42 }
 0xc23   : > { %v1089_v44 = vpop.xlane.xlu0 %1088 }
 0xc24   : > { %v2967_v45 = vpop.eup %2966  ;;  %2976 = vrcp.f32 %v1098_v43  ;;  %v1099_v46 = vadd.f32 1e-06, %v1089_v44 }
 0xc25   : > { %v1092_v47 = vpop.xlane.xlu1 %1091  ;;  %v1102_v50 = vmul.f32 %v2967_v45, %v1054_v0 }
 0xc26   : > { %v2969_v48 = vpop.eup %2968  ;;  %2978 = vrcp.f32 %v1099_v46  ;;  %v1100_v49 = vadd.f32 1e-06, %v1092_v47 }
 0xc27   : > { %v1104_v51 = vmul.f32 %v2969_v48, %v1056_v12 }
 0xc28   : > { %v2971_v52 = vpop.eup %2970  ;;  %2980 = vrcp.f32 %v1100_v49 }
 0xc29   : > { %v1117_v53 = vpack.c.bf16 %v1104_v51, %v1102_v50  ;;  %v1106_v55 = vmul.f32 %v2971_v52, %v1058_v15 }
 0xc2a   : > { %v2973_v54 = vpop.eup %2972 }
 0xc2b   : > { %v1108_v56 = vmul.f32 %v2973_v54, %v1060_v18  ;;  %2612 = vmatprep.mubr.msk.bf16.mxu1 %vm312_vm0, %v1117_v53 }
 0xc2c   : > { %v2975_v57 = vpop.eup %2974 }
 0xc2d   : > { %v1118_v58 = vpack.c.bf16 %v1108_v56, %v1106_v55  ;;  %v1110_v60 = vmul.f32 %v2975_v57, %v1062_v21 }
 0xc2e   : > { %v2977_v59 = vpop.eup %2976 }
 0xc2f   : > { %2613 = vmatmul.mubr.msk.bf16.vlgmr.msra.gmra.mrb[16].mxu1 %vm312_vm0, %v1118_v58  ;;  %v1112_v61 = vmul.f32 %v2977_v59, %v1064_v24 }
 0xc30   : > { %v2979_v62 = vpop.eup %2978 }
 0xc31   : > { %v1119_v63 = vpack.c.bf16 %v1112_v61, %v1110_v60  ;;  %v1114_v7 = vmul.f32 %v2979_v62, %v1066_v27 }
 0xc32   : > { %v2981_v4 = vpop.eup %2980 }
 0xc33   : > { %2616 = vmatprep.mubr.msk.bf16.mxu1 %vm312_vm0, %v1119_v63  ;;  %v1116_v8 = vmul.f32 %v2981_v4, %v1068_v30 }
 0xc35   : > { %v1120_v9 = vpack.c.bf16 %v1116_v8, %v1114_v7 }
 0xc37   : > { %2617 = vmatmul.mubr.msk.bf16.gmra.mrb[20].mxu1 %vm312_vm0, %v1120_v9 }
 0xc38   : > { %2628 = vmatprep.mubr.bf16.mxu1 %v3492_v6 }
 0xd02   : > { %v2614_v0 = vpop.f32.mrb[16].mxu1 }
 0xd03   : > { %v1167_v2 = vpop.f32.mrb[17].mxu1  ;;  %v1200_v14 = vmul.f32 %v2614_v0, %v2614_v0 }
 0xd04   : > { %v2615_v5 = vpop.f32.mrb[18].mxu1  ;;  %v1198_v10 = vmul.f32 %v1167_v2, %v1167_v2 }
 0xd05   : > { %v1170_v12 = vpop.f32.mrb[19].mxu1  ;;  %v1201_v15 = vmul.f32 %v2615_v5, %v2615_v5 }
 0xd06   : > { %1206 = vadd.xlane.f32.xlu0 %v1198_v10  ;;  %v1199_v13 = vmul.f32 %v1170_v12, %v1170_v12 }
 0xd08   : > { %1208 = vadd.xlane.f32.xlu1 %v1199_v13 }
 0xd0a   : > { %1210 = vadd.xlane.f32.xlu0 %v1200_v14  ;;  %v2618_v16 = vpop.f32.mrb[20].mxu1 }
 0xd0b   : > { %v1183_v17 = vpop.f32.mrb[21].mxu1  ;;  %v1204_v22 = vmul.f32 %v2618_v16, %v2618_v16 }
 0xd0c   : > { %v1202_v18 = vmul.f32 %v1183_v17, %v1183_v17  ;;  %1212 = vadd.xlane.f32.xlu1 %v1201_v15  ;;  %v2619_v19 = vpop.f32.mrb[22].mxu1 }
 0xd0d   : > { %v1186_v20 = vpop.f32.mrb[23].mxu1  ;;  %v1205_v23 = vmul.f32 %v2619_v19, %v2619_v19 }
 0xd0e   : > { %v1203_v21 = vmul.f32 %v1186_v20, %v1186_v20  ;;  %1214 = vadd.xlane.f32.xlu0 %v1202_v18 }
 0xd10   : > { %1216 = vadd.xlane.f32.xlu1 %v1203_v21 }
 0xd12   : > { %1218 = vadd.xlane.f32.xlu0 %v1204_v22 }
 0xd14   : > { %1220 = vadd.xlane.f32.xlu1 %v1205_v23 }
 0xd93   : > { %v1207_v24 = vpop.xlane.xlu0 %1206 }
 0xd94   : > { %v1222_v25 = vmax.f32 %v1207_v24, 1e-12 }
 0xd95   : > { %v1209_v26 = vpop.xlane.xlu1 %1208 }
 0xd96   : > { %2982 = vrsqrt.f32 %v1222_v25  ;;  %v1223_v27 = vmax.f32 %v1209_v26, 1e-12 }
 0xd97   : > { %v1211_v28 = vpop.xlane.xlu0 %1210 }
 0xd98   : > { %2984 = vrsqrt.f32 %v1223_v27  ;;  %v1224_v29 = vmax.f32 %v1211_v28, 1e-12 }
 0xd99   : > { %v1213_v30 = vpop.xlane.xlu1 %1212 }
 0xd9a   : > { %2986 = vrsqrt.f32 %v1224_v29  ;;  %v1225_v31 = vmax.f32 %v1213_v30, 1e-12 }
 0xd9b   : > { %v1215_v32 = vpop.xlane.xlu0 %1214 }
 0xd9c   : > { %2988 = vrsqrt.f32 %v1225_v31  ;;  %v1226_v33 = vmax.f32 %v1215_v32, 1e-12 }
 0xd9d   : > { %v1217_v34 = vpop.xlane.xlu1 %1216 }
 0xd9e   : > { %2990 = vrsqrt.f32 %v1226_v33  ;;  %v1227_v35 = vmax.f32 %v1217_v34, 1e-12 }
 0xd9f   : > { %v1219_v36 = vpop.xlane.xlu0 %1218 }
 0xda0   : > { %v2983_v37 = vpop.eup %2982  ;;  %2992 = vrsqrt.f32 %v1227_v35  ;;  %v1228_v38 = vmax.f32 %v1219_v36, 1e-12 }
 0xda1   : > { %v1221_v39 = vpop.xlane.xlu1 %1220  ;;  %v1238_v42 = vmul.f32 %v2983_v37, %v1167_v2 }
 0xda2   : > { %v2985_v40 = vpop.eup %2984  ;;  %2994 = vrsqrt.f32 %v1228_v38  ;;  %v1229_v41 = vmax.f32 %v1221_v39, 1e-12 }
 0xda3   : > { %v1239_v43 = vmul.f32 %v2985_v40, %v1170_v12 }
 0xda4   : > { %v2987_v44 = vpop.eup %2986  ;;  %2996 = vrsqrt.f32 %v1229_v41 }
 0xda5   : > { %v1246_v45 = vpack.c.bf16 %v1239_v43, %v1238_v42  ;;  %v1240_v47 = vmul.f32 %v2987_v44, %v2614_v0 }
 0xda6   : > { %v2989_v46 = vpop.eup %2988 }
 0xda7   : > { %2620 = vmatprep.subr.bf16.mxu1 %v1246_v45  ;;  %v1241_v48 = vmul.f32 %v2989_v46, %v2615_v5 }
 0xda8   : > { %v2991_v49 = vpop.eup %2990  ;;  %2621 = vmatpush3.bf16.xpose.msra.mxu1 %v1246_v45 }
 0xda9   : > { %v1247_v50 = vpack.c.bf16 %v1241_v48, %v1240_v47  ;;  %v1242_v52 = vmul.f32 %v2991_v49, %v1183_v17 }
 0xdaa   : > { %v2993_v51 = vpop.eup %2992 }
 0xdab   : > { %2622 = vmatprep.subr.bf16.mxu1 %v1247_v50  ;;  %v1243_v53 = vmul.f32 %v2993_v51, %v1186_v20 }
 0xdac   : > { %v2995_v54 = vpop.eup %2994 }
 0xdad   : > { %v1248_v55 = vpack.c.bf16 %v1243_v53, %v1242_v52  ;;  %v1244_v57 = vmul.f32 %v2995_v54, %v2618_v16 }
 0xdae   : > { %v2997_v56 = vpop.eup %2996 }
 0xdaf   : > { %v1245_v58 = vmul.f32 %v2997_v56, %v2619_v19 }
 0xdb0   : > { %2623 = vmatpush3.bf16.xpose.msra.mxu1 %v1247_v50 }
 0xdb1   : > { %2624 = vmatprep.subr.bf16.mxu1 %v1248_v55  ;;  %v1249_v59 = vpack.c.bf16 %v1245_v58, %v1244_v57 }
 0xdb8   : > { %2625 = vmatpush3.bf16.xpose.msra.mxu1 %v1248_v55 }
 0xdb9   : > { %2626 = vmatprep.subr.bf16.mxu1 %v1249_v59 }
 0xdc0   : > { %2627 = vmatpush3.bf16.xpose.msra.mxu1 %v1249_v59 }
 0xdc1   : > { %2668 = vmatprep.subr.bf16.mxu1 %v3492_v6 }
 0xdc7   : > { %2629 = vmatmul.mubr.bf16.vlgmr.msra.gmra.mrb[24].mxu1 %v3490_v3 }
 0xdc8   : > { %2632 = vmatprep.mubr.bf16.mxu1 %v3500_v1  ;;  %2669 = vmatpush3.bf16.msra.mxu1 %v3492_v6 }
 0xdc9   : > { %2670 = vmatprep.subr.bf16.mxu1 %v3490_v3 }
 0xdcc   : > { %2671 = vmatpush3.bf16.msra.mxu1 %v3490_v3 }
 0xdcd   : > { %2672 = vmatprep.subr.bf16.mxu1 %v3500_v1 }
 0xdcf   : > { %2633 = vmatmul.mubr.bf16.gmra.mrb[28].mxu1 %v3509_v11 }
 0xdd0   : > { %2673 = vmatpush3.bf16.msra.mxu1 %v3500_v1 }
 0xdd1   : > { %2674 = vmatprep.subr.bf16.mxu1 %v3509_v11 }
 0xdd4   : > { %2675 = vmatpush3.bf16.msra.mxu1 %v3509_v11 }
 0xe9a   : > { %v2630_v60 = vpop.f32.mrb[24].mxu1 }
 0xe9b   : > { %v1284_v61 = vpop.f32.mrb[25].mxu1  ;;  %v1321_v8 = vsel %vm312_vm0, %v2630_v60, -inf }
 0xe9c   : > { %v2631_v62 = vpop.f32.mrb[26].mxu1  ;;  %v1315_v63 = vsel %vm312_vm0, %v1284_v61, -inf }
 0xe9d   : > { %1316 = vmax.xlane.f32.xlu0 %v1315_v63  ;;  %v1287_v4 = vpop.f32.mrb[27].mxu1  ;;  %v1324_v0 = vsel %vm312_vm0, %v2631_v62, -inf }
 0xe9e   : > { %v1318_v7 = vsel %vm312_vm0, %v1287_v4, -inf }
 0xe9f   : > { %1319 = vmax.xlane.f32.xlu1 %v1318_v7 }
 0xea1   : > { %1322 = vmax.xlane.f32.xlu0 %v1321_v8 }
 0xea2   : > { %v2634_v9 = vpop.f32.mrb[28].mxu1 }
 0xea3   : > { %1325 = vmax.xlane.f32.xlu1 %v1324_v0  ;;  %v1300_v2 = vpop.f32.mrb[29].mxu1  ;;  %v1333_v14 = vsel %vm312_vm0, %v2634_v9, -inf }
 0xea4   : > { %v2635_v5 = vpop.f32.mrb[30].mxu1  ;;  %v1327_v10 = vsel %vm312_vm0, %v1300_v2, -inf }
 0xea5   : > { %1328 = vmax.xlane.f32.xlu0 %v1327_v10  ;;  %v1303_v12 = vpop.f32.mrb[31].mxu1  ;;  %v1336_v15 = vsel %vm312_vm0, %v2635_v5, -inf }
 0xea6   : > { %v1330_v13 = vsel %vm312_vm0, %v1303_v12, -inf }
 0xea7   : > { %1331 = vmax.xlane.f32.xlu1 %v1330_v13 }
 0xea9   : > { %1334 = vmax.xlane.f32.xlu0 %v1333_v14 }
 0xeab   : > { %1337 = vmax.xlane.f32.xlu1 %v1336_v15 }
 0xf2a   : > { %v1317_v16 = vpop.xlane.xlu0 %1316 }
 0xf2b   : > { %v1339_v17 = vsub.f32 %v1284_v61, %v1317_v16 }
 0xf2c   : > { %v1320_v18 = vpop.xlane.xlu1 %1319 }
 0xf2d   : > { %v1347_v19 = vmul.f32 1.442695, %v1339_v17  ;;  %v1340_v20 = vsub.f32 %v1287_v4, %v1320_v18 }
 0xf2e   : > { %v1323_v21 = vpop.xlane.xlu0 %1322 }
 0xf2f   : > { %2998 = vpow2.f32 %v1347_v19  ;;  %v1349_v22 = vmul.f32 1.442695, %v1340_v20  ;;  %v1341_v23 = vsub.f32 %v2630_v60, %v1323_v21 }
 0xf30   : > { %v1326_v24 = vpop.xlane.xlu1 %1325 }
 0xf31   : > { %3000 = vpow2.f32 %v1349_v22  ;;  %v1351_v25 = vmul.f32 1.442695, %v1341_v23  ;;  %v1342_v26 = vsub.f32 %v2631_v62, %v1326_v24 }
 0xf32   : > { %v1329_v27 = vpop.xlane.xlu0 %1328 }
 0xf33   : > { %3002 = vpow2.f32 %v1351_v25  ;;  %v1353_v28 = vmul.f32 1.442695, %v1342_v26  ;;  %v1343_v29 = vsub.f32 %v1300_v2, %v1329_v27 }
 0xf34   : > { %v1332_v30 = vpop.xlane.xlu1 %1331 }
 0xf35   : > { %3004 = vpow2.f32 %v1353_v28  ;;  %v1355_v31 = vmul.f32 1.442695, %v1343_v29  ;;  %v1344_v32 = vsub.f32 %v1303_v12, %v1332_v30 }
 0xf36   : > { %v1335_v33 = vpop.xlane.xlu0 %1334 }
 0xf37   : > { %3006 = vpow2.f32 %v1355_v31  ;;  %v1357_v34 = vmul.f32 1.442695, %v1344_v32  ;;  %v1345_v35 = vsub.f32 %v2634_v9, %v1335_v33 }
 0xf38   : > { %v1338_v36 = vpop.xlane.xlu1 %1337 }
 0xf39   : > { %v2999_v37 = vpop.eup %2998  ;;  %3008 = vpow2.f32 %v1357_v34  ;;  %v1359_v38 = vmul.f32 1.442695, %v1345_v35  ;;  %v1346_v39 = vsub.f32 %v2635_v5, %v1338_v36 }
 0xf3a   : > { %v1363_v40 = vsel %vm312_vm0, %v2999_v37, 0.0 }
 0xf3b   : > { %v3001_v41 = vpop.eup %3000  ;;  %3010 = vpow2.f32 %v1359_v38  ;;  %v1361_v42 = vmul.f32 1.442695, %v1346_v39  ;;  %1364 = vadd.xlane.f32.xlu0 %v1363_v40 }
 0xf3c   : > { %v1366_v43 = vsel %vm312_vm0, %v3001_v41, 0.0 }
 0xf3d   : > { %v3003_v44 = vpop.eup %3002  ;;  %3012 = vpow2.f32 %v1361_v42  ;;  %1367 = vadd.xlane.f32.xlu1 %v1366_v43 }
 0xf3e   : > { %v1369_v45 = vsel %vm312_vm0, %v3003_v44, 0.0 }
 0xf3f   : > { %v3005_v46 = vpop.eup %3004  ;;  %1370 = vadd.xlane.f32.xlu0 %v1369_v45 }
 0xf40   : > { %v1372_v47 = vsel %vm312_vm0, %v3005_v46, 0.0 }
 0xf41   : > { %v3007_v48 = vpop.eup %3006  ;;  %1373 = vadd.xlane.f32.xlu1 %v1372_v47 }
 0xf42   : > { %v1375_v49 = vsel %vm312_vm0, %v3007_v48, 0.0 }
 0xf43   : > { %v3009_v50 = vpop.eup %3008  ;;  %1376 = vadd.xlane.f32.xlu0 %v1375_v49 }
 0xf44   : > { %v1378_v51 = vsel %vm312_vm0, %v3009_v50, 0.0 }
 0xf45   : > { %v3011_v52 = vpop.eup %3010  ;;  %1379 = vadd.xlane.f32.xlu1 %v1378_v51 }
 0xf46   : > { %v1381_v53 = vsel %vm312_vm0, %v3011_v52, 0.0 }
 0xf47   : > { %v3013_v54 = vpop.eup %3012  ;;  %1382 = vadd.xlane.f32.xlu0 %v1381_v53 }
 0xf48   : > { %v1384_v55 = vsel %vm312_vm0, %v3013_v54, 0.0 }
 0xf49   : > { %1385 = vadd.xlane.f32.xlu1 %v1384_v55 }
 0xfc8   : > { %v1365_v56 = vpop.xlane.xlu0 %1364 }
 0xfc9   : > { %3014 = vrcp.f32 %v1365_v56 }
 0xfca   : > { %v1368_v57 = vpop.xlane.xlu1 %1367 }
 0xfcb   : > { %3016 = vrcp.f32 %v1368_v57 }
 0xfcc   : > { %v1371_v58 = vpop.xlane.xlu0 %1370 }
 0xfcd   : > { %3018 = vrcp.f32 %v1371_v58 }
 0xfce   : > { %v1374_v59 = vpop.xlane.xlu1 %1373 }
 0xfcf   : > { %3020 = vrcp.f32 %v1374_v59 }
 0xfd0   : > { %v1377_v60 = vpop.xlane.xlu0 %1376 }
 0xfd1   : > { %3022 = vrcp.f32 %v1377_v60 }
 0xfd2   : > { %v1380_v61 = vpop.xlane.xlu1 %1379 }
 0xfd3   : > { %v3015_v62 = vpop.eup %3014  ;;  %3024 = vrcp.f32 %v1380_v61 }
 0xfd4   : > { %v1383_v63 = vpop.xlane.xlu0 %1382  ;;  %v1388_v4 = vmul.f32 %v3015_v62, %v2999_v37 }
 0xfd5   : > { %v3017_v7 = vpop.eup %3016  ;;  %3026 = vrcp.f32 %v1383_v63 }
 0xfd6   : > { %v1386_v8 = vpop.xlane.xlu1 %1385  ;;  %v1403_v9 = vsel %vm312_vm0, %v1388_v4, 0.0  ;;  %v1390_v0 = vmul.f32 %v3017_v7, %v3001_v41 }
 0xfd7   : > { %v3019_v2 = vpop.eup %3018  ;;  %3028 = vrcp.f32 %v1386_v8  ;;  %1404 = vadd.xlane.f32.xlu0 %v1403_v9 }
 0xfd8   : > { %v1406_v5 = vsel %vm312_vm0, %v1390_v0, 0.0  ;;  %v1392_v10 = vmul.f32 %v3019_v2, %v3003_v44 }
 0xfd9   : > { %v3021_v12 = vpop.eup %3020  ;;  %1407 = vadd.xlane.f32.xlu1 %v1406_v5 }
 0xfda   : > { %v1409_v13 = vsel %vm312_vm0, %v1392_v10, 0.0  ;;  %v1394_v14 = vmul.f32 %v3021_v12, %v3005_v46 }
 0xfdb   : > { %v3023_v15 = vpop.eup %3022  ;;  %1410 = vadd.xlane.f32.xlu0 %v1409_v13 }
 0xfdc   : > { %v1412_v16 = vsel %vm312_vm0, %v1394_v14, 0.0  ;;  %v1396_v17 = vmul.f32 %v3023_v15, %v3007_v48 }
 0xfdd   : > { %v3025_v18 = vpop.eup %3024  ;;  %1413 = vadd.xlane.f32.xlu1 %v1412_v16 }
 0xfde   : > { %v1415_v19 = vsel %vm312_vm0, %v1396_v17, 0.0  ;;  %v1398_v20 = vmul.f32 %v3025_v18, %v3009_v50 }
 0xfdf   : > { %v3027_v21 = vpop.eup %3026  ;;  %1416 = vadd.xlane.f32.xlu0 %v1415_v19 }
 0xfe0   : > { %v1418_v22 = vsel %vm312_vm0, %v1398_v20, 0.0  ;;  %v1400_v23 = vmul.f32 %v3027_v21, %v3011_v52 }
 0xfe1   : > { %v3029_v24 = vpop.eup %3028  ;;  %1419 = vadd.xlane.f32.xlu1 %v1418_v22 }
 0xfe2   : > { %v1421_v25 = vsel %vm312_vm0, %v1400_v23, 0.0  ;;  %v1402_v26 = vmul.f32 %v3029_v24, %v3013_v54 }
 0xfe3   : > { %1422 = vadd.xlane.f32.xlu0 %v1421_v25 }
 0xfe4   : > { %v1424_v27 = vsel %vm312_vm0, %v1402_v26, 0.0 }
 0xfe5   : > { %1425 = vadd.xlane.f32.xlu1 %v1424_v27 }
0x1064   : > { %v1405_v28 = vpop.xlane.xlu0 %1404 }
0x1065   : > { %v1427_v29 = vadd.f32 1e-06, %v1405_v28 }
0x1066   : > { %v1408_v30 = vpop.xlane.xlu1 %1407 }
0x1067   : > { %3030 = vrcp.f32 %v1427_v29  ;;  %v1428_v31 = vadd.f32 1e-06, %v1408_v30 }
0x1068   : > { %v1411_v32 = vpop.xlane.xlu0 %1410 }
0x1069   : > { %3032 = vrcp.f32 %v1428_v31  ;;  %v1429_v33 = vadd.f32 1e-06, %v1411_v32 }
0x106a   : > { %v1414_v34 = vpop.xlane.xlu1 %1413 }
0x106b   : > { %3034 = vrcp.f32 %v1429_v33  ;;  %v1430_v35 = vadd.f32 1e-06, %v1414_v34 }
0x106c   : > { %v1417_v36 = vpop.xlane.xlu0 %1416 }
0x106d   : > { %3036 = vrcp.f32 %v1430_v35  ;;  %v1431_v37 = vadd.f32 1e-06, %v1417_v36 }
0x106e   : > { %v1420_v38 = vpop.xlane.xlu1 %1419 }
0x106f   : > { %3038 = vrcp.f32 %v1431_v37  ;;  %v1432_v39 = vadd.f32 1e-06, %v1420_v38 }
0x1070   : > { %v1423_v40 = vpop.xlane.xlu0 %1422 }
0x1071   : > { %v3031_v41 = vpop.eup %3030  ;;  %3040 = vrcp.f32 %v1432_v39  ;;  %v1433_v42 = vadd.f32 1e-06, %v1423_v40 }
0x1072   : > { %v1426_v43 = vpop.xlane.xlu1 %1425  ;;  %v1436_v46 = vmul.f32 %v3031_v41, %v1388_v4 }
0x1073   : > { %v3033_v44 = vpop.eup %3032  ;;  %3042 = vrcp.f32 %v1433_v42  ;;  %v1434_v45 = vadd.f32 1e-06, %v1426_v43 }
0x1074   : > { %v1438_v47 = vmul.f32 %v3033_v44, %v1390_v0 }
0x1075   : > { %v3035_v48 = vpop.eup %3034  ;;  %3044 = vrcp.f32 %v1434_v45 }
0x1076   : > { %v1451_v49 = vpack.c.bf16 %v1438_v47, %v1436_v46  ;;  %v1440_v51 = vmul.f32 %v3035_v48, %v1392_v10 }
0x1077   : > { %v3037_v50 = vpop.eup %3036 }
0x1078   : > { %v1442_v52 = vmul.f32 %v3037_v50, %v1394_v14  ;;  %2644 = vmatprep.mubr.msk.bf16.mxu0 %vm312_vm0, %v1451_v49 }
0x1079   : > { %v3039_v53 = vpop.eup %3038 }
0x107a   : > { %v1452_v54 = vpack.c.bf16 %v1442_v52, %v1440_v51  ;;  %v1444_v56 = vmul.f32 %v3039_v53, %v1396_v17 }
0x107b   : > { %v3041_v55 = vpop.eup %3040 }
0x107c   : > { %2645 = vmatmul.mubr.msk.bf16.vlgmr.msra.gmra.mrb[24].mxu0 %vm312_vm0, %v1452_v54  ;;  %v1446_v57 = vmul.f32 %v3041_v55, %v1398_v20 }
0x107d   : > { %v3043_v58 = vpop.eup %3042 }
0x107e   : > { %v1453_v59 = vpack.c.bf16 %v1446_v57, %v1444_v56  ;;  %v1448_v61 = vmul.f32 %v3043_v58, %v1400_v23 }
0x107f   : > { %v3045_v60 = vpop.eup %3044 }
0x1080   : > { %2648 = vmatprep.mubr.msk.bf16.mxu0 %vm312_vm0, %v1453_v59  ;;  %v1450_v62 = vmul.f32 %v3045_v60, %v1402_v26 }
0x1082   : > { %v1454_v63 = vpack.c.bf16 %v1450_v62, %v1448_v61 }
0x1084   : > { %2649 = vmatmul.mubr.msk.bf16.gmra.mrb[28].mxu0 %vm312_vm0, %v1454_v63 }
0x1085   : > { %2660 = vmatprep.mubr.bf16.mxu0 %v3492_v6 }
0x114f   : > { %v2646_v4 = vpop.f32.mrb[24].mxu0 }
0x1150   : > { %v1501_v7 = vpop.f32.mrb[25].mxu0  ;;  %v1534_v5 = vmul.f32 %v2646_v4, %v2646_v4 }
0x1151   : > { %v1532_v8 = vmul.f32 %v1501_v7, %v1501_v7  ;;  %v2647_v9 = vpop.f32.mrb[26].mxu0 }
0x1152   : > { %v1504_v0 = vpop.f32.mrb[27].mxu0  ;;  %v1535_v10 = vmul.f32 %v2647_v9, %v2647_v9 }
0x1153   : > { %v1533_v2 = vmul.f32 %v1504_v0, %v1504_v0  ;;  %1540 = vadd.xlane.f32.xlu0 %v1532_v8 }
0x1155   : > { %1542 = vadd.xlane.f32.xlu1 %v1533_v2 }
0x1157   : > { %1544 = vadd.xlane.f32.xlu0 %v1534_v5  ;;  %v2650_v12 = vpop.f32.mrb[28].mxu0 }
0x1158   : > { %v1517_v13 = vpop.f32.mrb[29].mxu0  ;;  %v1538_v18 = vmul.f32 %v2650_v12, %v2650_v12 }
0x1159   : > { %v1536_v14 = vmul.f32 %v1517_v13, %v1517_v13  ;;  %1546 = vadd.xlane.f32.xlu1 %v1535_v10  ;;  %v2651_v15 = vpop.f32.mrb[30].mxu0 }
0x115a   : > { %v1520_v16 = vpop.f32.mrb[31].mxu0  ;;  %v1539_v19 = vmul.f32 %v2651_v15, %v2651_v15 }
0x115b   : > { %v1537_v17 = vmul.f32 %v1520_v16, %v1520_v16  ;;  %1548 = vadd.xlane.f32.xlu0 %v1536_v14 }
0x115d   : > { %1550 = vadd.xlane.f32.xlu1 %v1537_v17 }
0x115f   : > { %1552 = vadd.xlane.f32.xlu0 %v1538_v18 }
0x1161   : > { %1554 = vadd.xlane.f32.xlu1 %v1539_v19 }
0x11e0   : > { %v1541_v20 = vpop.xlane.xlu0 %1540 }
0x11e1   : > { %v1556_v21 = vmax.f32 %v1541_v20, 1e-12 }
0x11e2   : > { %v1543_v22 = vpop.xlane.xlu1 %1542 }
0x11e3   : > { %3046 = vrsqrt.f32 %v1556_v21  ;;  %v1557_v23 = vmax.f32 %v1543_v22, 1e-12 }
0x11e4   : > { %v1545_v24 = vpop.xlane.xlu0 %1544 }
0x11e5   : > { %3048 = vrsqrt.f32 %v1557_v23  ;;  %v1558_v25 = vmax.f32 %v1545_v24, 1e-12 }
0x11e6   : > { %v1547_v26 = vpop.xlane.xlu1 %1546 }
0x11e7   : > { %3050 = vrsqrt.f32 %v1558_v25  ;;  %v1559_v27 = vmax.f32 %v1547_v26, 1e-12 }
0x11e8   : > { %v1549_v28 = vpop.xlane.xlu0 %1548 }
0x11e9   : > { %3052 = vrsqrt.f32 %v1559_v27  ;;  %v1560_v29 = vmax.f32 %v1549_v28, 1e-12 }
0x11ea   : > { %v1551_v30 = vpop.xlane.xlu1 %1550 }
0x11eb   : > { %3054 = vrsqrt.f32 %v1560_v29  ;;  %v1561_v31 = vmax.f32 %v1551_v30, 1e-12 }
0x11ec   : > { %v1553_v32 = vpop.xlane.xlu0 %1552 }
0x11ed   : > { %v3047_v33 = vpop.eup %3046  ;;  %3056 = vrsqrt.f32 %v1561_v31  ;;  %v1562_v34 = vmax.f32 %v1553_v32, 1e-12 }
0x11ee   : > { %v1555_v35 = vpop.xlane.xlu1 %1554  ;;  %v1572_v38 = vmul.f32 %v3047_v33, %v1501_v7 }
0x11ef   : > { %v3049_v36 = vpop.eup %3048  ;;  %3058 = vrsqrt.f32 %v1562_v34  ;;  %v1563_v37 = vmax.f32 %v1555_v35, 1e-12 }
0x11f0   : > { %v1573_v39 = vmul.f32 %v3049_v36, %v1504_v0 }
0x11f1   : > { %v3051_v40 = vpop.eup %3050  ;;  %3060 = vrsqrt.f32 %v1563_v37 }
0x11f2   : > { %v1580_v41 = vpack.c.bf16 %v1573_v39, %v1572_v38  ;;  %v1574_v43 = vmul.f32 %v3051_v40, %v2646_v4 }
0x11f3   : > { %v3053_v42 = vpop.eup %3052 }
0x11f4   : > { %2652 = vmatprep.subr.bf16.mxu0 %v1580_v41  ;;  %v1575_v44 = vmul.f32 %v3053_v42, %v2647_v9 }
0x11f5   : > { %v3055_v45 = vpop.eup %3054  ;;  %2653 = vmatpush3.bf16.xpose.msra.mxu0 %v1580_v41 }
0x11f6   : > { %v1581_v46 = vpack.c.bf16 %v1575_v44, %v1574_v43  ;;  %v1576_v48 = vmul.f32 %v3055_v45, %v1517_v13 }
0x11f7   : > { %v3057_v47 = vpop.eup %3056 }
0x11f8   : > { %2654 = vmatprep.subr.bf16.mxu0 %v1581_v46  ;;  %v1577_v49 = vmul.f32 %v3057_v47, %v1520_v16 }
0x11f9   : > { %v3059_v50 = vpop.eup %3058 }
0x11fa   : > { %v1582_v51 = vpack.c.bf16 %v1577_v49, %v1576_v48  ;;  %v1578_v53 = vmul.f32 %v3059_v50, %v2650_v12 }
0x11fb   : > { %v3061_v52 = vpop.eup %3060 }
0x11fc   : > { %v1579_v54 = vmul.f32 %v3061_v52, %v2651_v15 }
0x11fd   : > { %2655 = vmatpush3.bf16.xpose.msra.mxu0 %v1581_v46 }
0x11fe   : > { %2656 = vmatprep.subr.bf16.mxu0 %v1582_v51  ;;  %v1583_v55 = vpack.c.bf16 %v1579_v54, %v1578_v53 }
0x1205   : > { %2657 = vmatpush3.bf16.xpose.msra.mxu0 %v1582_v51 }
0x1206   : > { %2658 = vmatprep.subr.bf16.mxu0 %v1583_v55 }
0x120d   : > { %2659 = vmatpush3.bf16.xpose.msra.mxu0 %v1583_v55 }
0x120e   : > { %2700 = vmatprep.subr.bf16.mxu0 %v3492_v6 }
0x1214   : > { %2661 = vmatmul.mubr.bf16.vlgmr.msra.gmra.mrb[32].mxu0 %v3490_v3 }
0x1215   : > { %2664 = vmatprep.mubr.bf16.mxu0 %v3500_v1  ;;  %2701 = vmatpush3.bf16.msra.mxu0 %v3492_v6 }
0x1216   : > { %2702 = vmatprep.subr.bf16.mxu0 %v3490_v3 }
0x1219   : > { %2703 = vmatpush3.bf16.msra.mxu0 %v3490_v3 }
0x121a   : > { %2704 = vmatprep.subr.bf16.mxu0 %v3500_v1 }
0x121c   : > { %2665 = vmatmul.mubr.bf16.gmra.mrb[36].mxu0 %v3509_v11 }
0x121d   : > { %2705 = vmatpush3.bf16.msra.mxu0 %v3500_v1 }
0x121e   : > { %2706 = vmatprep.subr.bf16.mxu0 %v3509_v11 }
0x1221   : > { %2707 = vmatpush3.bf16.msra.mxu0 %v3509_v11 }
0x12e7   : > { %v2662_v56 = vpop.f32.mrb[32].mxu0 }
0x12e8   : > { %v1618_v57 = vpop.f32.mrb[33].mxu0  ;;  %v1655_v62 = vsel %vm312_vm0, %v2662_v56, -inf }
0x12e9   : > { %v2663_v58 = vpop.f32.mrb[34].mxu0  ;;  %v1649_v59 = vsel %vm312_vm0, %v1618_v57, -inf }
0x12ea   : > { %1650 = vmax.xlane.f32.xlu0 %v1649_v59  ;;  %v1621_v60 = vpop.f32.mrb[35].mxu0  ;;  %v1658_v4 = vsel %vm312_vm0, %v2663_v58, -inf }
0x12eb   : > { %v1652_v61 = vsel %vm312_vm0, %v1621_v60, -inf }
0x12ec   : > { %1653 = vmax.xlane.f32.xlu1 %v1652_v61 }
0x12ee   : > { %1656 = vmax.xlane.f32.xlu0 %v1655_v62 }
0x12ef   : > { %v2666_v63 = vpop.f32.mrb[36].mxu0 }
0x12f0   : > { %1659 = vmax.xlane.f32.xlu1 %v1658_v4  ;;  %v1634_v7 = vpop.f32.mrb[37].mxu0  ;;  %v1667_v5 = vsel %vm312_vm0, %v2666_v63, -inf }
0x12f1   : > { %v2667_v8 = vpop.f32.mrb[38].mxu0  ;;  %v1661_v9 = vsel %vm312_vm0, %v1634_v7, -inf }
0x12f2   : > { %1662 = vmax.xlane.f32.xlu0 %v1661_v9  ;;  %v1637_v0 = vpop.f32.mrb[39].mxu0  ;;  %v1670_v10 = vsel %vm312_vm0, %v2667_v8, -inf }
0x12f3   : > { %v1664_v2 = vsel %vm312_vm0, %v1637_v0, -inf }
0x12f4   : > { %1665 = vmax.xlane.f32.xlu1 %v1664_v2 }
0x12f6   : > { %1668 = vmax.xlane.f32.xlu0 %v1667_v5 }
0x12f8   : > { %1671 = vmax.xlane.f32.xlu1 %v1670_v10 }
0x1377   : > { %v1651_v12 = vpop.xlane.xlu0 %1650 }
0x1378   : > { %v1673_v13 = vsub.f32 %v1618_v57, %v1651_v12 }
0x1379   : > { %v1654_v14 = vpop.xlane.xlu1 %1653 }
0x137a   : > { %v1681_v15 = vmul.f32 1.442695, %v1673_v13  ;;  %v1674_v16 = vsub.f32 %v1621_v60, %v1654_v14 }
0x137b   : > { %v1657_v17 = vpop.xlane.xlu0 %1656 }
0x137c   : > { %3062 = vpow2.f32 %v1681_v15  ;;  %v1683_v18 = vmul.f32 1.442695, %v1674_v16  ;;  %v1675_v19 = vsub.f32 %v2662_v56, %v1657_v17 }
0x137d   : > { %v1660_v20 = vpop.xlane.xlu1 %1659 }
0x137e   : > { %3064 = vpow2.f32 %v1683_v18  ;;  %v1685_v21 = vmul.f32 1.442695, %v1675_v19  ;;  %v1676_v22 = vsub.f32 %v2663_v58, %v1660_v20 }
0x137f   : > { %v1663_v23 = vpop.xlane.xlu0 %1662 }
0x1380   : > { %3066 = vpow2.f32 %v1685_v21  ;;  %v1687_v24 = vmul.f32 1.442695, %v1676_v22  ;;  %v1677_v25 = vsub.f32 %v1634_v7, %v1663_v23 }
0x1381   : > { %v1666_v26 = vpop.xlane.xlu1 %1665 }
0x1382   : > { %3068 = vpow2.f32 %v1687_v24  ;;  %v1689_v27 = vmul.f32 1.442695, %v1677_v25  ;;  %v1678_v28 = vsub.f32 %v1637_v0, %v1666_v26 }
0x1383   : > { %v1669_v29 = vpop.xlane.xlu0 %1668 }
0x1384   : > { %3070 = vpow2.f32 %v1689_v27  ;;  %v1691_v30 = vmul.f32 1.442695, %v1678_v28  ;;  %v1679_v31 = vsub.f32 %v2666_v63, %v1669_v29 }
0x1385   : > { %v1672_v32 = vpop.xlane.xlu1 %1671 }
0x1386   : > { %v3063_v33 = vpop.eup %3062  ;;  %3072 = vpow2.f32 %v1691_v30  ;;  %v1693_v34 = vmul.f32 1.442695, %v1679_v31  ;;  %v1680_v35 = vsub.f32 %v2667_v8, %v1672_v32 }
0x1387   : > { %v1697_v36 = vsel %vm312_vm0, %v3063_v33, 0.0 }
0x1388   : > { %v3065_v37 = vpop.eup %3064  ;;  %3074 = vpow2.f32 %v1693_v34  ;;  %v1695_v38 = vmul.f32 1.442695, %v1680_v35  ;;  %1698 = vadd.xlane.f32.xlu0 %v1697_v36 }
0x1389   : > { %v1700_v39 = vsel %vm312_vm0, %v3065_v37, 0.0 }
0x138a   : > { %v3067_v40 = vpop.eup %3066  ;;  %3076 = vpow2.f32 %v1695_v38  ;;  %1701 = vadd.xlane.f32.xlu1 %v1700_v39 }
0x138b   : > { %v1703_v41 = vsel %vm312_vm0, %v3067_v40, 0.0 }
0x138c   : > { %v3069_v42 = vpop.eup %3068  ;;  %1704 = vadd.xlane.f32.xlu0 %v1703_v41 }
0x138d   : > { %v1706_v43 = vsel %vm312_vm0, %v3069_v42, 0.0 }
0x138e   : > { %v3071_v44 = vpop.eup %3070  ;;  %1707 = vadd.xlane.f32.xlu1 %v1706_v43 }
0x138f   : > { %v1709_v45 = vsel %vm312_vm0, %v3071_v44, 0.0 }
0x1390   : > { %v3073_v46 = vpop.eup %3072  ;;  %1710 = vadd.xlane.f32.xlu0 %v1709_v45 }
0x1391   : > { %v1712_v47 = vsel %vm312_vm0, %v3073_v46, 0.0 }
0x1392   : > { %v3075_v48 = vpop.eup %3074  ;;  %1713 = vadd.xlane.f32.xlu1 %v1712_v47 }
0x1393   : > { %v1715_v49 = vsel %vm312_vm0, %v3075_v48, 0.0 }
0x1394   : > { %v3077_v50 = vpop.eup %3076  ;;  %1716 = vadd.xlane.f32.xlu0 %v1715_v49 }
0x1395   : > { %v1718_v51 = vsel %vm312_vm0, %v3077_v50, 0.0 }
0x1396   : > { %1719 = vadd.xlane.f32.xlu1 %v1718_v51 }
0x1415   : > { %v1699_v52 = vpop.xlane.xlu0 %1698 }
0x1416   : > { %3078 = vrcp.f32 %v1699_v52 }
0x1417   : > { %v1702_v53 = vpop.xlane.xlu1 %1701 }
0x1418   : > { %3080 = vrcp.f32 %v1702_v53 }
0x1419   : > { %v1705_v54 = vpop.xlane.xlu0 %1704 }
0x141a   : > { %3082 = vrcp.f32 %v1705_v54 }
0x141b   : > { %v1708_v55 = vpop.xlane.xlu1 %1707 }
0x141c   : > { %3084 = vrcp.f32 %v1708_v55 }
0x141d   : > { %v1711_v56 = vpop.xlane.xlu0 %1710 }
0x141e   : > { %3086 = vrcp.f32 %v1711_v56 }
0x141f   : > { %v1714_v57 = vpop.xlane.xlu1 %1713 }
0x1420   : > { %v3079_v58 = vpop.eup %3078  ;;  %3088 = vrcp.f32 %v1714_v57 }
0x1421   : > { %v1717_v59 = vpop.xlane.xlu0 %1716  ;;  %v1722_v60 = vmul.f32 %v3079_v58, %v3063_v33 }
0x1422   : > { %v3081_v61 = vpop.eup %3080  ;;  %3090 = vrcp.f32 %v1717_v59 }
0x1423   : > { %v1720_v62 = vpop.xlane.xlu1 %1719  ;;  %v1737_v63 = vsel %vm312_vm0, %v1722_v60, 0.0  ;;  %v1724_v4 = vmul.f32 %v3081_v61, %v3065_v37 }
0x1424   : > { %v3083_v7 = vpop.eup %3082  ;;  %3092 = vrcp.f32 %v1720_v62  ;;  %1738 = vadd.xlane.f32.xlu0 %v1737_v63 }
0x1425   : > { %v1740_v8 = vsel %vm312_vm0, %v1724_v4, 0.0  ;;  %v1726_v9 = vmul.f32 %v3083_v7, %v3067_v40 }
0x1426   : > { %v3085_v0 = vpop.eup %3084  ;;  %1741 = vadd.xlane.f32.xlu1 %v1740_v8 }
0x1427   : > { %v1743_v2 = vsel %vm312_vm0, %v1726_v9, 0.0  ;;  %v1728_v5 = vmul.f32 %v3085_v0, %v3069_v42 }
0x1428   : > { %v3087_v10 = vpop.eup %3086  ;;  %1744 = vadd.xlane.f32.xlu0 %v1743_v2 }
0x1429   : > { %v1746_v12 = vsel %vm312_vm0, %v1728_v5, 0.0  ;;  %v1730_v13 = vmul.f32 %v3087_v10, %v3071_v44 }
0x142a   : > { %v3089_v14 = vpop.eup %3088  ;;  %1747 = vadd.xlane.f32.xlu1 %v1746_v12 }
0x142b   : > { %v1749_v15 = vsel %vm312_vm0, %v1730_v13, 0.0  ;;  %v1732_v16 = vmul.f32 %v3089_v14, %v3073_v46 }
0x142c   : > { %v3091_v17 = vpop.eup %3090  ;;  %1750 = vadd.xlane.f32.xlu0 %v1749_v15 }
0x142d   : > { %v1752_v18 = vsel %vm312_vm0, %v1732_v16, 0.0  ;;  %v1734_v19 = vmul.f32 %v3091_v17, %v3075_v48 }
0x142e   : > { %v3093_v20 = vpop.eup %3092  ;;  %1753 = vadd.xlane.f32.xlu1 %v1752_v18 }
0x142f   : > { %v1755_v21 = vsel %vm312_vm0, %v1734_v19, 0.0  ;;  %v1736_v22 = vmul.f32 %v3093_v20, %v3077_v50 }
0x1430   : > { %1756 = vadd.xlane.f32.xlu0 %v1755_v21 }
0x1431   : > { %v1758_v23 = vsel %vm312_vm0, %v1736_v22, 0.0 }
0x1432   : > { %1759 = vadd.xlane.f32.xlu1 %v1758_v23 }
0x14b1   : > { %v1739_v24 = vpop.xlane.xlu0 %1738 }
0x14b2   : > { %v1761_v25 = vadd.f32 1e-06, %v1739_v24 }
0x14b3   : > { %v1742_v26 = vpop.xlane.xlu1 %1741 }
0x14b4   : > { %3094 = vrcp.f32 %v1761_v25  ;;  %v1762_v27 = vadd.f32 1e-06, %v1742_v26 }
0x14b5   : > { %v1745_v28 = vpop.xlane.xlu0 %1744 }
0x14b6   : > { %3096 = vrcp.f32 %v1762_v27  ;;  %v1763_v29 = vadd.f32 1e-06, %v1745_v28 }
0x14b7   : > { %v1748_v30 = vpop.xlane.xlu1 %1747 }
0x14b8   : > { %3098 = vrcp.f32 %v1763_v29  ;;  %v1764_v31 = vadd.f32 1e-06, %v1748_v30 }
0x14b9   : > { %v1751_v32 = vpop.xlane.xlu0 %1750 }
0x14ba   : > { %3100 = vrcp.f32 %v1764_v31  ;;  %v1765_v33 = vadd.f32 1e-06, %v1751_v32 }
0x14bb   : > { %v1754_v34 = vpop.xlane.xlu1 %1753 }
0x14bc   : > { %3102 = vrcp.f32 %v1765_v33  ;;  %v1766_v35 = vadd.f32 1e-06, %v1754_v34 }
0x14bd   : > { %v1757_v36 = vpop.xlane.xlu0 %1756 }
0x14be   : > { %v3095_v37 = vpop.eup %3094  ;;  %3104 = vrcp.f32 %v1766_v35  ;;  %v1767_v38 = vadd.f32 1e-06, %v1757_v36 }
0x14bf   : > { %v1760_v39 = vpop.xlane.xlu1 %1759  ;;  %v1770_v42 = vmul.f32 %v3095_v37, %v1722_v60 }
0x14c0   : > { %v3097_v40 = vpop.eup %3096  ;;  %3106 = vrcp.f32 %v1767_v38  ;;  %v1768_v41 = vadd.f32 1e-06, %v1760_v39 }
0x14c1   : > { %v1772_v43 = vmul.f32 %v3097_v40, %v1724_v4 }
0x14c2   : > { %v3099_v44 = vpop.eup %3098  ;;  %3108 = vrcp.f32 %v1768_v41 }
0x14c3   : > { %v1785_v45 = vpack.c.bf16 %v1772_v43, %v1770_v42  ;;  %v1774_v47 = vmul.f32 %v3099_v44, %v1726_v9 }
0x14c4   : > { %v3101_v46 = vpop.eup %3100 }
0x14c5   : > { %v1776_v48 = vmul.f32 %v3101_v46, %v1728_v5  ;;  %2676 = vmatprep.mubr.msk.bf16.mxu1 %vm312_vm0, %v1785_v45 }
0x14c6   : > { %v3103_v49 = vpop.eup %3102 }
0x14c7   : > { %v1786_v50 = vpack.c.bf16 %v1776_v48, %v1774_v47  ;;  %v1778_v52 = vmul.f32 %v3103_v49, %v1730_v13 }
0x14c8   : > { %v3105_v51 = vpop.eup %3104 }
0x14c9   : > { %2677 = vmatmul.mubr.msk.bf16.vlgmr.msra.gmra.mrb[32].mxu1 %vm312_vm0, %v1786_v50  ;;  %v1780_v53 = vmul.f32 %v3105_v51, %v1732_v16 }
0x14ca   : > { %v3107_v54 = vpop.eup %3106 }
0x14cb   : > { %v1787_v55 = vpack.c.bf16 %v1780_v53, %v1778_v52  ;;  %v1782_v57 = vmul.f32 %v3107_v54, %v1734_v19 }
0x14cc   : > { %v3109_v56 = vpop.eup %3108 }
0x14cd   : > { %2680 = vmatprep.mubr.msk.bf16.mxu1 %vm312_vm0, %v1787_v55  ;;  %v1784_v58 = vmul.f32 %v3109_v56, %v1736_v22 }
0x14cf   : > { %v1788_v59 = vpack.c.bf16 %v1784_v58, %v1782_v57 }
0x14d1   : > { %2681 = vmatmul.mubr.msk.bf16.gmra.mrb[36].mxu1 %vm312_vm0, %v1788_v59 }
0x14d2   : > { %2692 = vmatprep.mubr.bf16.mxu1 %v3492_v6 }
0x159c   : > { %v2678_v60 = vpop.f32.mrb[32].mxu1 }
0x159d   : > { %v1835_v61 = vpop.f32.mrb[33].mxu1  ;;  %v1868_v8 = vmul.f32 %v2678_v60, %v2678_v60 }
0x159e   : > { %v1866_v62 = vmul.f32 %v1835_v61, %v1835_v61  ;;  %v2679_v63 = vpop.f32.mrb[34].mxu1 }
0x159f   : > { %v1838_v4 = vpop.f32.mrb[35].mxu1  ;;  %v1869_v9 = vmul.f32 %v2679_v63, %v2679_v63 }
0x15a0   : > { %v1867_v7 = vmul.f32 %v1838_v4, %v1838_v4  ;;  %1874 = vadd.xlane.f32.xlu0 %v1866_v62 }
0x15a2   : > { %1876 = vadd.xlane.f32.xlu1 %v1867_v7 }
0x15a4   : > { %1878 = vadd.xlane.f32.xlu0 %v1868_v8  ;;  %v2682_v0 = vpop.f32.mrb[36].mxu1 }
0x15a5   : > { %v1851_v2 = vpop.f32.mrb[37].mxu1  ;;  %v1872_v6 = vmul.f32 %v2682_v0, %v2682_v0 }
0x15a6   : > { %v1870_v5 = vmul.f32 %v1851_v2, %v1851_v2  ;;  %1880 = vadd.xlane.f32.xlu1 %v1869_v9  ;;  %v2683_v10 = vpop.f32.mrb[38].mxu1 }
0x15a7   : > { %v1854_v12 = vpop.f32.mrb[39].mxu1  ;;  %v1873_v14 = vmul.f32 %v2683_v10, %v2683_v10 }
0x15a8   : > { %v1871_v13 = vmul.f32 %v1854_v12, %v1854_v12  ;;  %1882 = vadd.xlane.f32.xlu0 %v1870_v5 }
0x15aa   : > { %1884 = vadd.xlane.f32.xlu1 %v1871_v13 }
0x15ac   : > { %1886 = vadd.xlane.f32.xlu0 %v1872_v6 }
0x15ae   : > { %1888 = vadd.xlane.f32.xlu1 %v1873_v14 }
0x162d   : > { %v1875_v15 = vpop.xlane.xlu0 %1874 }
0x162e   : > { %v1890_v16 = vmax.f32 %v1875_v15, 1e-12 }
0x162f   : > { %v1877_v17 = vpop.xlane.xlu1 %1876 }
0x1630   : > { %3110 = vrsqrt.f32 %v1890_v16  ;;  %v1891_v18 = vmax.f32 %v1877_v17, 1e-12 }
0x1631   : > { %v1879_v19 = vpop.xlane.xlu0 %1878 }
0x1632   : > { %3112 = vrsqrt.f32 %v1891_v18  ;;  %v1892_v20 = vmax.f32 %v1879_v19, 1e-12 }
0x1633   : > { %v1881_v21 = vpop.xlane.xlu1 %1880 }
0x1634   : > { %3114 = vrsqrt.f32 %v1892_v20  ;;  %v1893_v22 = vmax.f32 %v1881_v21, 1e-12 }
0x1635   : > { %v1883_v23 = vpop.xlane.xlu0 %1882 }
0x1636   : > { %3116 = vrsqrt.f32 %v1893_v22  ;;  %v1894_v24 = vmax.f32 %v1883_v23, 1e-12 }
0x1637   : > { %v1885_v25 = vpop.xlane.xlu1 %1884 }
0x1638   : > { %3118 = vrsqrt.f32 %v1894_v24  ;;  %v1895_v26 = vmax.f32 %v1885_v25, 1e-12 }
0x1639   : > { %v1887_v27 = vpop.xlane.xlu0 %1886 }
0x163a   : > { %v3111_v28 = vpop.eup %3110  ;;  %3120 = vrsqrt.f32 %v1895_v26  ;;  %v1896_v29 = vmax.f32 %v1887_v27, 1e-12 }
0x163b   : > { %v1889_v30 = vpop.xlane.xlu1 %1888  ;;  %v1906_v33 = vmul.f32 %v3111_v28, %v1835_v61 }
0x163c   : > { %v3113_v31 = vpop.eup %3112  ;;  %3122 = vrsqrt.f32 %v1896_v29  ;;  %v1897_v32 = vmax.f32 %v1889_v30, 1e-12 }
0x163d   : > { %v1907_v34 = vmul.f32 %v3113_v31, %v1838_v4 }
0x163e   : > { %v3115_v35 = vpop.eup %3114  ;;  %3124 = vrsqrt.f32 %v1897_v32 }
0x163f   : > { %v1914_v36 = vpack.c.bf16 %v1907_v34, %v1906_v33  ;;  %v1908_v38 = vmul.f32 %v3115_v35, %v2678_v60 }
0x1640   : > { %v3117_v37 = vpop.eup %3116 }
0x1641   : > { %2684 = vmatprep.subr.bf16.mxu1 %v1914_v36  ;;  %v1909_v39 = vmul.f32 %v3117_v37, %v2679_v63 }
0x1642   : > { %v3119_v40 = vpop.eup %3118  ;;  %2685 = vmatpush3.bf16.xpose.msra.mxu1 %v1914_v36 }
0x1643   : > { %v1915_v41 = vpack.c.bf16 %v1909_v39, %v1908_v38  ;;  %v1910_v43 = vmul.f32 %v3119_v40, %v1851_v2 }
0x1644   : > { %v3121_v42 = vpop.eup %3120 }
0x1645   : > { %2686 = vmatprep.subr.bf16.mxu1 %v1915_v41  ;;  %v1911_v44 = vmul.f32 %v3121_v42, %v1854_v12 }
0x1646   : > { %v3123_v45 = vpop.eup %3122 }
0x1647   : > { %v1916_v46 = vpack.c.bf16 %v1911_v44, %v1910_v43  ;;  %v1912_v48 = vmul.f32 %v3123_v45, %v2682_v0 }
0x1648   : > { %v3125_v47 = vpop.eup %3124 }
0x1649   : > { %v1913_v49 = vmul.f32 %v3125_v47, %v2683_v10 }
0x164a   : > { %2687 = vmatpush3.bf16.xpose.msra.mxu1 %v1915_v41 }
0x164b   : > { %2688 = vmatprep.subr.bf16.mxu1 %v1916_v46  ;;  %v1917_v50 = vpack.c.bf16 %v1913_v49, %v1912_v48 }
0x1652   : > { %2689 = vmatpush3.bf16.xpose.msra.mxu1 %v1916_v46 }
0x1653   : > { %2690 = vmatprep.subr.bf16.mxu1 %v1917_v50 }
0x165a   : > { %2691 = vmatpush3.bf16.xpose.msra.mxu1 %v1917_v50 }
0x1661   : > { %2693 = vmatmul.mubr.bf16.vlgmr.msra.gmra.mrb[40].mxu1 %v3490_v3 }
0x1662   : > { %2696 = vmatprep.mubr.bf16.mxu1 %v3500_v1 }
0x1669   : > { %2697 = vmatmul.mubr.bf16.gmra.mrb[44].mxu1 %v3509_v11 }
0x1734   : > { %v2694_v51 = vpop.f32.mrb[40].mxu1 }
0x1735   : > { %v1952_v52 = vpop.f32.mrb[41].mxu1  ;;  %v1989_v57 = vsel %vm312_vm0, %v2694_v51, -inf }
0x1736   : > { %v2695_v53 = vpop.f32.mrb[42].mxu1  ;;  %v1983_v54 = vsel %vm312_vm0, %v1952_v52, -inf }
0x1737   : > { %1984 = vmax.xlane.f32.xlu0 %v1983_v54  ;;  %v1955_v55 = vpop.f32.mrb[43].mxu1  ;;  %v1992_v3 = vsel %vm312_vm0, %v2695_v53, -inf }
0x1738   : > { %v1986_v56 = vsel %vm312_vm0, %v1955_v55, -inf }
0x1739   : > { %1987 = vmax.xlane.f32.xlu1 %v1986_v56 }
0x173b   : > { %1990 = vmax.xlane.f32.xlu0 %v1989_v57 }
0x173c   : > { %v2698_v58 = vpop.f32.mrb[44].mxu1 }
0x173d   : > { %1993 = vmax.xlane.f32.xlu1 %v1992_v3  ;;  %v1968_v1 = vpop.f32.mrb[45].mxu1  ;;  %v2001_v62 = vsel %vm312_vm0, %v2698_v58, -inf }
0x173e   : > { %v2699_v59 = vpop.f32.mrb[46].mxu1  ;;  %v1995_v11 = vsel %vm312_vm0, %v1968_v1, -inf }
0x173f   : > { %1996 = vmax.xlane.f32.xlu0 %v1995_v11  ;;  %v1971_v60 = vpop.f32.mrb[47].mxu1  ;;  %v2004_v63 = vsel %vm312_vm0, %v2699_v59, -inf }
0x1740   : > { %v1998_v61 = vsel %vm312_vm0, %v1971_v60, -inf }
0x1741   : > { %1999 = vmax.xlane.f32.xlu1 %v1998_v61 }
0x1743   : > { %2002 = vmax.xlane.f32.xlu0 %v2001_v62 }
0x1745   : > { %2005 = vmax.xlane.f32.xlu1 %v2004_v63 }
0x17c4   : > { %v1985_v4 = vpop.xlane.xlu0 %1984 }
0x17c5   : > { %v2007_v7 = vsub.f32 %v1952_v52, %v1985_v4 }
0x17c6   : > { %v1988_v8 = vpop.xlane.xlu1 %1987 }
0x17c7   : > { %v2015_v9 = vmul.f32 1.442695, %v2007_v7  ;;  %v2008_v0 = vsub.f32 %v1955_v55, %v1988_v8 }
0x17c8   : > { %v1991_v2 = vpop.xlane.xlu0 %1990 }
0x17c9   : > { %3126 = vpow2.f32 %v2015_v9  ;;  %v2017_v5 = vmul.f32 1.442695, %v2008_v0  ;;  %v2009_v10 = vsub.f32 %v2694_v51, %v1991_v2 }
0x17ca   : > { %v1994_v12 = vpop.xlane.xlu1 %1993 }
0x17cb   : > { %3128 = vpow2.f32 %v2017_v5  ;;  %v2019_v13 = vmul.f32 1.442695, %v2009_v10  ;;  %v2010_v6 = vsub.f32 %v2695_v53, %v1994_v12 }
0x17cc   : > { %v1997_v14 = vpop.xlane.xlu0 %1996 }
0x17cd   : > { %3130 = vpow2.f32 %v2019_v13  ;;  %v2021_v15 = vmul.f32 1.442695, %v2010_v6  ;;  %v2011_v16 = vsub.f32 %v1968_v1, %v1997_v14 }
0x17ce   : > { %v2000_v17 = vpop.xlane.xlu1 %1999 }
0x17cf   : > { %3132 = vpow2.f32 %v2021_v15  ;;  %v2023_v18 = vmul.f32 1.442695, %v2011_v16  ;;  %v2012_v19 = vsub.f32 %v1971_v60, %v2000_v17 }
0x17d0   : > { %v2003_v20 = vpop.xlane.xlu0 %2002 }
0x17d1   : > { %3134 = vpow2.f32 %v2023_v18  ;;  %v2025_v21 = vmul.f32 1.442695, %v2012_v19  ;;  %v2013_v22 = vsub.f32 %v2698_v58, %v2003_v20 }
0x17d2   : > { %v2006_v23 = vpop.xlane.xlu1 %2005 }
0x17d3   : > { %v3127_v24 = vpop.eup %3126  ;;  %3136 = vpow2.f32 %v2025_v21  ;;  %v2027_v25 = vmul.f32 1.442695, %v2013_v22  ;;  %v2014_v26 = vsub.f32 %v2699_v59, %v2006_v23 }
0x17d4   : > { %v2031_v27 = vsel %vm312_vm0, %v3127_v24, 0.0 }
0x17d5   : > { %v3129_v28 = vpop.eup %3128  ;;  %3138 = vpow2.f32 %v2027_v25  ;;  %v2029_v29 = vmul.f32 1.442695, %v2014_v26  ;;  %2032 = vadd.xlane.f32.xlu0 %v2031_v27 }
0x17d6   : > { %v2034_v30 = vsel %vm312_vm0, %v3129_v28, 0.0 }
0x17d7   : > { %v3131_v31 = vpop.eup %3130  ;;  %3140 = vpow2.f32 %v2029_v29  ;;  %2035 = vadd.xlane.f32.xlu1 %v2034_v30 }
0x17d8   : > { %v2037_v32 = vsel %vm312_vm0, %v3131_v31, 0.0 }
0x17d9   : > { %v3133_v33 = vpop.eup %3132  ;;  %2038 = vadd.xlane.f32.xlu0 %v2037_v32 }
0x17da   : > { %v2040_v34 = vsel %vm312_vm0, %v3133_v33, 0.0 }
0x17db   : > { %v3135_v35 = vpop.eup %3134  ;;  %2041 = vadd.xlane.f32.xlu1 %v2040_v34 }
0x17dc   : > { %v2043_v36 = vsel %vm312_vm0, %v3135_v35, 0.0 }
0x17dd   : > { %v3137_v37 = vpop.eup %3136  ;;  %2044 = vadd.xlane.f32.xlu0 %v2043_v36 }
0x17de   : > { %v2046_v38 = vsel %vm312_vm0, %v3137_v37, 0.0 }
0x17df   : > { %v3139_v39 = vpop.eup %3138  ;;  %2047 = vadd.xlane.f32.xlu1 %v2046_v38 }
0x17e0   : > { %v2049_v40 = vsel %vm312_vm0, %v3139_v39, 0.0 }
0x17e1   : > { %v3141_v41 = vpop.eup %3140  ;;  %2050 = vadd.xlane.f32.xlu0 %v2049_v40 }
0x17e2   : > { %v2052_v42 = vsel %vm312_vm0, %v3141_v41, 0.0 }
0x17e3   : > { %2053 = vadd.xlane.f32.xlu1 %v2052_v42 }
0x1862   : > { %v2033_v43 = vpop.xlane.xlu0 %2032 }
0x1863   : > { %3142 = vrcp.f32 %v2033_v43 }
0x1864   : > { %v2036_v44 = vpop.xlane.xlu1 %2035 }
0x1865   : > { %3144 = vrcp.f32 %v2036_v44 }
0x1866   : > { %v2039_v45 = vpop.xlane.xlu0 %2038 }
0x1867   : > { %3146 = vrcp.f32 %v2039_v45 }
0x1868   : > { %v2042_v46 = vpop.xlane.xlu1 %2041 }
0x1869   : > { %3148 = vrcp.f32 %v2042_v46 }
0x186a   : > { %v2045_v47 = vpop.xlane.xlu0 %2044 }
0x186b   : > { %3150 = vrcp.f32 %v2045_v47 }
0x186c   : > { %v2048_v48 = vpop.xlane.xlu1 %2047 }
0x186d   : > { %v3143_v49 = vpop.eup %3142  ;;  %3152 = vrcp.f32 %v2048_v48 }
0x186e   : > { %v2051_v50 = vpop.xlane.xlu0 %2050  ;;  %v2056_v51 = vmul.f32 %v3143_v49, %v3127_v24 }
0x186f   : > { %v3145_v52 = vpop.eup %3144  ;;  %3154 = vrcp.f32 %v2051_v50 }
0x1870   : > { %v2054_v53 = vpop.xlane.xlu1 %2053  ;;  %v2071_v54 = vsel %vm312_vm0, %v2056_v51, 0.0  ;;  %v2058_v55 = vmul.f32 %v3145_v52, %v3129_v28 }
0x1871   : > { %v3147_v56 = vpop.eup %3146  ;;  %3156 = vrcp.f32 %v2054_v53  ;;  %2072 = vadd.xlane.f32.xlu0 %v2071_v54 }
0x1872   : > { %v2074_v57 = vsel %vm312_vm0, %v2058_v55, 0.0  ;;  %v2060_v58 = vmul.f32 %v3147_v56, %v3131_v31 }
0x1873   : > { %v3149_v3 = vpop.eup %3148  ;;  %2075 = vadd.xlane.f32.xlu1 %v2074_v57 }
0x1874   : > { %v2077_v1 = vsel %vm312_vm0, %v2060_v58, 0.0  ;;  %v2062_v59 = vmul.f32 %v3149_v3, %v3133_v33 }
0x1875   : > { %v3151_v11 = vpop.eup %3150  ;;  %2078 = vadd.xlane.f32.xlu0 %v2077_v1 }
0x1876   : > { %v2080_v60 = vsel %vm312_vm0, %v2062_v59, 0.0  ;;  %v2064_v61 = vmul.f32 %v3151_v11, %v3135_v35 }
0x1877   : > { %v3153_v62 = vpop.eup %3152  ;;  %2081 = vadd.xlane.f32.xlu1 %v2080_v60 }
0x1878   : > { %v2083_v63 = vsel %vm312_vm0, %v2064_v61, 0.0  ;;  %v2066_v4 = vmul.f32 %v3153_v62, %v3137_v37 }
0x1879   : > { %v3155_v7 = vpop.eup %3154  ;;  %2084 = vadd.xlane.f32.xlu0 %v2083_v63 }
0x187a   : > { %v2086_v8 = vsel %vm312_vm0, %v2066_v4, 0.0  ;;  %v2068_v9 = vmul.f32 %v3155_v7, %v3139_v39 }
0x187b   : > { %v3157_v0 = vpop.eup %3156  ;;  %2087 = vadd.xlane.f32.xlu1 %v2086_v8 }
0x187c   : > { %v2089_v2 = vsel %vm312_vm0, %v2068_v9, 0.0  ;;  %v2070_v5 = vmul.f32 %v3157_v0, %v3141_v41 }
0x187d   : > { %2090 = vadd.xlane.f32.xlu0 %v2089_v2 }
0x187e   : > { %v2092_v10 = vsel %vm312_vm0, %v2070_v5, 0.0 }
0x187f   : > { %2093 = vadd.xlane.f32.xlu1 %v2092_v10 }
0x18fe   : > { %v2073_v12 = vpop.xlane.xlu0 %2072 }
0x18ff   : > { %v2095_v13 = vadd.f32 1e-06, %v2073_v12 }
0x1900   : > { %v2076_v6 = vpop.xlane.xlu1 %2075 }
0x1901   : > { %3158 = vrcp.f32 %v2095_v13  ;;  %v2096_v14 = vadd.f32 1e-06, %v2076_v6 }
0x1902   : > { %v2079_v15 = vpop.xlane.xlu0 %2078 }
0x1903   : > { %3160 = vrcp.f32 %v2096_v14  ;;  %v2097_v16 = vadd.f32 1e-06, %v2079_v15 }
0x1904   : > { %v2082_v17 = vpop.xlane.xlu1 %2081 }
0x1905   : > { %3162 = vrcp.f32 %v2097_v16  ;;  %v2098_v18 = vadd.f32 1e-06, %v2082_v17 }
0x1906   : > { %v2085_v19 = vpop.xlane.xlu0 %2084 }
0x1907   : > { %3164 = vrcp.f32 %v2098_v18  ;;  %v2099_v20 = vadd.f32 1e-06, %v2085_v19 }
0x1908   : > { %v2088_v21 = vpop.xlane.xlu1 %2087 }
0x1909   : > { %3166 = vrcp.f32 %v2099_v20  ;;  %v2100_v22 = vadd.f32 1e-06, %v2088_v21 }
0x190a   : > { %v2091_v23 = vpop.xlane.xlu0 %2090 }
0x190b   : > { %v3159_v24 = vpop.eup %3158  ;;  %3168 = vrcp.f32 %v2100_v22  ;;  %v2101_v25 = vadd.f32 1e-06, %v2091_v23 }
0x190c   : > { %v2094_v26 = vpop.xlane.xlu1 %2093  ;;  %v2104_v29 = vmul.f32 %v3159_v24, %v2056_v51 }
0x190d   : > { %v3161_v27 = vpop.eup %3160  ;;  %3170 = vrcp.f32 %v2101_v25  ;;  %v2102_v28 = vadd.f32 1e-06, %v2094_v26 }
0x190e   : > { %v2106_v30 = vmul.f32 %v3161_v27, %v2058_v55 }
0x190f   : > { %v3163_v31 = vpop.eup %3162  ;;  %3172 = vrcp.f32 %v2102_v28 }
0x1910   : > { %v2119_v32 = vpack.c.bf16 %v2106_v30, %v2104_v29  ;;  %v2108_v34 = vmul.f32 %v3163_v31, %v2060_v58 }
0x1911   : > { %v3165_v33 = vpop.eup %3164 }
0x1912   : > { %v2110_v35 = vmul.f32 %v3165_v33, %v2062_v59  ;;  %2708 = vmatprep.mubr.msk.bf16.mxu0 %vm312_vm0, %v2119_v32 }
0x1913   : > { %v3167_v36 = vpop.eup %3166 }
0x1914   : > { %v2120_v37 = vpack.c.bf16 %v2110_v35, %v2108_v34  ;;  %v2112_v39 = vmul.f32 %v3167_v36, %v2064_v61 }
0x1915   : > { %v3169_v38 = vpop.eup %3168 }
0x1916   : > { %2709 = vmatmul.mubr.msk.bf16.vlgmr.msra.gmra.mrb[40].mxu0 %vm312_vm0, %v2120_v37  ;;  %v2114_v40 = vmul.f32 %v3169_v38, %v2066_v4 }
0x1917   : > { %v3171_v41 = vpop.eup %3170 }
0x1918   : > { %v2121_v42 = vpack.c.bf16 %v2114_v40, %v2112_v39  ;;  %v2116_v44 = vmul.f32 %v3171_v41, %v2068_v9 }
0x1919   : > { %v3173_v43 = vpop.eup %3172 }
0x191a   : > { %2712 = vmatprep.mubr.msk.bf16.mxu0 %vm312_vm0, %v2121_v42  ;;  %2728 = vmatprep.mubr.msk.bf16.mxu1 %vm312_vm0, %v2121_v42  ;;  %v2118_v45 = vmul.f32 %v3173_v43, %v2070_v5 }
0x191c   : > { %v2122_v46 = vpack.c.bf16 %v2118_v45, %v2116_v44 }
0x191e   : > { %2713 = vmatmul.mubr.msk.bf16.gmra.mrb[44].mxu0 %vm312_vm0, %v2122_v46 }
0x191f   : > { %2724 = vmatprep.mubr.msk.bf16.mxu0 %vm312_vm0, %v2119_v32 }
0x19e9   : > { %v2710_v47 = vpop.f32.mrb[40].mxu0 }
0x19ea   : > { %v2169_v48 = vpop.f32.mrb[41].mxu0 }
0x19eb   : > { %v2711_v49 = vpop.f32.mrb[42].mxu0 }
0x19ec   : > { %v2201_v50 = vpack.c.bf16 %v2711_v49, %v2710_v47  ;;  %v2172_v51 = vpop.f32.mrb[43].mxu0 }
0x19ed   : > { %v2200_v52 = vpack.c.bf16 %v2172_v51, %v2169_v48 }
0x19ef   : > { %2716 = vmatprep.subr.bf16.mxu0 %v2200_v52  ;;  %2732 = vmatprep.subr.bf16.mxu1 %v2200_v52 }
0x19f0   : > { %2717 = vmatpush3.bf16.msra.mxu0 %v2200_v52  ;;  %2736 = vmatpush3.bf16.msra.mxu1 %v2200_v52 }
0x19f1   : > { %v2714_v53 = vpop.f32.mrb[44].mxu0  ;;  %2718 = vmatprep.subr.bf16.mxu0 %v2201_v50  ;;  %2733 = vmatprep.subr.bf16.mxu1 %v2201_v50 }
0x19f2   : > { %v2185_v54 = vpop.f32.mrb[45].mxu0 }
0x19f3   : > { %v2715_v55 = vpop.f32.mrb[46].mxu0 }
0x19f4   : > { %v2203_v56 = vpack.c.bf16 %v2715_v55, %v2714_v53  ;;  %v2188_v57 = vpop.f32.mrb[47].mxu0  ;;  %2719 = vmatpush3.bf16.msra.mxu0 %v2201_v50  ;;  %2737 = vmatpush3.bf16.msra.mxu1 %v2201_v50 }
0x19f5   : > { %v2202_v58 = vpack.c.bf16 %v2188_v57, %v2185_v54 }
0x19f7   : > { %2720 = vmatprep.subr.bf16.mxu0 %v2202_v58  ;;  %2734 = vmatprep.subr.bf16.mxu1 %v2202_v58 }
0x19f8   : > { %2721 = vmatpush3.bf16.msra.mxu0 %v2202_v58  ;;  %2738 = vmatpush3.bf16.msra.mxu1 %v2202_v58 }
0x19f9   : > { %2722 = vmatprep.subr.bf16.mxu0 %v2203_v56  ;;  %2735 = vmatprep.subr.bf16.mxu1 %v2203_v56 }
0x19fc   : > { %2723 = vmatpush3.bf16.msra.mxu0 %v2203_v56  ;;  %2739 = vmatpush3.bf16.msra.mxu1 %v2203_v56 }
0x19ff   : > { %2725 = vmatmul.mubr.msk.bf16.vlgmr.msra.gmra.mrb[48].mxu0 %vm312_vm0, %v2120_v37  ;;  %2729 = vmatmul.mubr.msk.bf16.vlgmr.msra.gmra.mrb[48].mxu1 %vm312_vm0, %v2122_v46 }
0x1ad2   : > { %v2726_v3 = vpop.f32.mrb[48].mxu0  ;;  %v2730_v1 = vpop.f32.mrb[48].mxu1 }
0x1ad3   : > { %2271 = vst [vmem:[%s161_s5 + $0x10] sm:$0xff] %v2726_v3  ;;  %2275 = vst [vmem:[%s161_s5 + $0x30] sm:$0xff] %v2730_v1  ;;  %v2238_v59 = vpop.f32.mrb[49].mxu0  ;;  %v2254_v11 = vpop.f32.mrb[49].mxu1 }
0x1ad4   : > { %2269 = vst [vmem:[%s161_s5] sm:$0xff] %v2238_v59  ;;  %2273 = vst [vmem:[%s161_s5 + $0x20] sm:$0xff] %v2254_v11  ;;  %v2727_v60 = vpop.f32.mrb[50].mxu0  ;;  %v2731_v61 = vpop.f32.mrb[50].mxu1 }
0x1ad5   : > { %2272 = vst [vmem:[%s161_s5 + $0x18] sm:$0xff] %v2727_v60  ;;  %2276 = vst [vmem:[%s161_s5 + $0x38] sm:$0xff] %v2731_v61  ;;  %v2241_v62 = vpop.f32.mrb[51].mxu0  ;;  %v2257_v63 = vpop.f32.mrb[51].mxu1 }
0x1ad6   : > { %2270 = vst [vmem:[%s161_s5 + $0x8] sm:$0xff] %v2241_v62  ;;  %2274 = vst [vmem:[%s161_s5 + $0x28] sm:$0xff] %v2257_v63 }
0x1ad7   : > { %3217 = shalt.err (!%p3214_p1)
}
0x1ad8   : > { %s3218_s14 = scalar_lea.hbm %s3754_s3, 1024  ;;  %s3222_s19 = scalar_lea.hbm %s3799_s2, 4096 }
0x1ad9   : > { %p3219_p3 = scmp.ne.s32.totalorder %s3754_s3, %s3218_s14  ;;  %p3223_p0 = scmp.lt.u32.totalorder %s3754_s3, %s3799_s2 }
0x1ada   : > { %p3224_p2 = scmp.lt.u32.totalorder %s3222_s19, %s3218_s14  ;;  %p3226_p6 = scmp.lt.u32.totalorder %s3218_s14, %s3754_s3 }
0x1adb   : > { %p3220_p4 = pnand %p3219_p3, %p3806_p10 }
0x1adc   : > { %p3225_p7 = por %p3224_p2, %p3223_p0 }
0x1add   : > { %p3221_p5 = pneg %p3220_p4 }
0x1ade   : > { %p3227_p11 = por %p3226_p6, %p3225_p7 }
0x1ae0   : > { %p3228_p12 = pnand %p3227_p11, %p3221_p5 }
0x1ae2   : > { %3231 = shalt.err (!%p3228_p12)
}
0x1ae3   : > { %s3276_s25 = smov 128   ;;  %s3277_s26 = smov 8  }
0x1ae4   : > { %2742 = dma.vmem_to_hbm [thread:$0]  (%p3806_p10), %s3749_s6, 1024, %s3754_s3, %s2278_s13, %s3276_s25, %s3276_s25, %s3277_s26  }
0x1ae5 PF: > { %p2753_p8 = scmp.ge.s32.totalorder %s3270_s12, 2  ;;  %s2306_s5 = sand.u32 1, %s3258_s9  }
0x1ae6   : > { %p3807_p9 = scmp.ne.s32.totalorder %s3804_s22, 0  ;;  %s2307_s28 = scalar_lea.sflag [#allocation4], %s2306_s5 }
0x1ae8   : > { %p2749_p13 = pnand %p2753_p8, %p3807_p9 }
0x1aea   : > { %3253 = dma.done.wait (!%p2749_p13), %s2307_s28, 1024  }
0x1aeb   : > { %3255 = vsyncadd (!%p2749_p13), %s2307_s28, 4294966272  ;;  %p15_p1 = scmp.ge.s32.totalorder %s3318_s15, 6   ;;  %s3808_s9 = smov %s3262_s10 }
0x1aec   : > { %s3809_s10 = smov %s3266_s11  ;;  %s3810_s11 = smov %s3330_s18 }
0x1aed   : > { %s3811_s12 = smov %s3318_s15  ;;  %17 = sbr.rel (!%p15_p1) target bundleno = 5 (0x5), region = 73 }
0x1af4   :  { %2312 = vsyncpa [#allocation3], 1 }
0x1af5   :  { %2314 = vsyncpa [#allocation3 + $0x1], 1 }
0x1af6   :  { %2315 = vsyncpa [#allocation4], 1 }
0x1af7   :  { %2317 = vsyncpa [#allocation4 + $0x1], 1 }

</bundles_post_ra>
